<compile_context>
chip_gen: v7x
topology: tpu7x:2x2x1
jax: 0.10.0
libtpu: 0.0.40
codegen_flags: <defaults>
</compile_context>

<pallas_src>
import functools

import jax
import jax.numpy as jnp
from jax.experimental import pallas as pl
from jax.experimental.pallas import tpu as pltpu

LANE = 128
SUBLANE = 8


def _round_up(x, m):
    return (x + m - 1) // m * m


def _vmem_capacity_bytes():
    """Generation-aware VMEM capacity (v5e/v6e: 128 MiB, v7x: 64 MiB/core)."""
    try:
        cap = getattr(pltpu.get_tpu_info(), "vmem_capacity_bytes", None)
        if cap:
            return int(cap)
    except Exception:
        pass
    return 64 * 1024 * 1024          # conservative fallback (smallest gen)


# ---------------------------------------------------------------------------
# Shared in-kernel math
# ---------------------------------------------------------------------------
def _mlp_head(y, mlpw_ref, mlpb_ref, *, n_mlp, f_gcn, f_mlp):
    """MLPReadout: (Linear+ReLU) x (n_mlp-1) followed by a final Linear."""
    for i in range(n_mlp):
        din = f_gcn if i == 0 else f_mlp
        y = jnp.dot(y.astype(jnp.bfloat16), mlpw_ref[i, :din, :],
                    preferred_element_type=jnp.float32) + mlpb_ref[i]
        if i < n_mlp - 1:
            y = jnp.maximum(y, 0.0)
    return y


# ---------------------------------------------------------------------------
# Path 1: small graphs -- one grid-less pallas_call, layers fully unrolled.
# ---------------------------------------------------------------------------
def _gcn_unrolled_kernel(x_ref, a_ref, sn_ref, w_ref, b_ref, shift_ref,
                         rmat_ref, mlpw_ref, mlpb_ref, logits_ref,
                         *, n_layers, n_mlp, res_flags, f_gcn, f_mlp):
    a = a_ref[...]                       # (Np, Np) bf16  D^-1/2 A D^-1/2
    snorm = sn_ref[...]                  # (Np, 1)  f32   nodes_num_norm_sqrt
    # embedding_h (in_feat_dropout is identity in eval mode)
    h = jnp.dot(x_ref[...], w_ref[0],
                preferred_element_type=jnp.float32) + b_ref[0]
    for li in range(n_layers):
        w, b, shift = w_ref[li + 1], b_ref[li + 1], shift_ref[li + 1]
        t = jnp.dot(h.astype(jnp.bfloat16), w,
                    preferred_element_type=jnp.float32)
        m = jnp.dot(a, t.astype(jnp.bfloat16),
                    preferred_element_type=jnp.float32)
        hn = jnp.maximum((m + b) * snorm + shift, 0.0)   # bias+graph/batch norm+ReLU
        h = hn + h if res_flags[li] else hn              # residual (static flag)
    y = jnp.dot(rmat_ref[...], h.astype(jnp.bfloat16),
                preferred_element_type=jnp.float32)      # mean readout
    logits_ref[...] = _mlp_head(y, mlpw_ref, mlpb_ref,
                                n_mlp=n_mlp, f_gcn=f_gcn, f_mlp=f_mlp)


# ---------------------------------------------------------------------------
# Path 2: medium graphs -- grid=(L+1,), streamed per-layer weights,
# single-buffered resident A_hat, readout/MLP weights fetched on the last step.
# ---------------------------------------------------------------------------
def _gcn_streamed_kernel(x_any, a_any, sn_ref, w_ref, b_ref, shift_ref,
                         rmat_any, mlpw_any, mlpb_any, logits_ref,
                         h_s, a_s, rmat_s, mlpw_s, mlpb_s,
                         *, res_mid, res_last, n_mlp, f_gcn, f_mlp):
    l = pl.program_id(0)
    n_steps = pl.num_programs(0)                  # = L + 1

    @pl.when(l == 0)
    def _init():
        # One-time HBM->VMEM copies into SINGLE-buffered scratch (the default
        # BlockSpec pipeline would double-buffer these constant-index blocks).
        pltpu.sync_copy(a_any, a_s)
        pltpu.sync_copy(x_any, h_s)
        # embedding_h: h = x @ W0 + b0
        h_s[...] = (jnp.dot(h_s[...], w_ref[0],
                            preferred_element_type=jnp.float32)
                    + b_ref[0]).astype(h_s.dtype)

    @pl.when(l > 0)
    def _gcn_layer():
        h_in = h_s[...]                                            # bf16
        t = jnp.dot(h_in, w_ref[0], preferred_element_type=jnp.float32)
        m = jnp.dot(a_s[...], t.astype(jnp.bfloat16),
                    preferred_element_type=jnp.float32)
        h = jnp.maximum((m + b_ref[0]) * sn_ref[...] + shift_ref[0], 0.0)
        res = jnp.where(l == n_steps - 1, res_last, res_mid)
        h_s[...] = (h + h_in.astype(jnp.float32) * res).astype(h_s.dtype)

    @pl.when(l == n_steps - 1)
    def _readout_mlp():
        # readout matrix / MLP weights are only needed here -> pulled from HBM
        # now instead of sitting double-buffered in VMEM for the whole grid.
        pltpu.sync_copy(rmat_any, rmat_s)
        pltpu.sync_copy(mlpw_any, mlpw_s)
        pltpu.sync_copy(mlpb_any, mlpb_s)
        y = jnp.dot(rmat_s[...], h_s[...], preferred_element_type=jnp.float32)
        logits_ref[...] = _mlp_head(y, mlpw_s, mlpb_s,
                                    n_mlp=n_mlp, f_gcn=f_gcn, f_mlp=f_mlp)


# ---------------------------------------------------------------------------
# Path 3: large graphs -- grid=(L, n_tiles), A_hat streamed as row panels.
# ---------------------------------------------------------------------------
def _gcn_tiled_kernel(h0_any, a_ref, sn_ref, w_ref, b_ref, shift_ref,
                      rmat_ref, mlpw_ref, mlpb_ref, logits_ref,
                      h_cur, h_nxt, racc,
                      *, res_mid, res_last, n_mlp, tile_rows, f_gcn, f_mlp):
    l = pl.program_id(0)                 # GCN layer index (embedding hoisted)
    t = pl.program_id(1)                 # node row-tile index
    n_layers = pl.num_programs(0)
    n_tiles = pl.num_programs(1)
    row0 = pl.multiple_of(t * tile_rows, tile_rows)

    @pl.when(jnp.logical_and(l == 0, t == 0))
    def _prime():                        # h0 = embedding_h(x), computed in XLA
        pltpu.sync_copy(h0_any, h_cur)

    # One GCN layer on rows [row0, row0 + tile_rows):  ((A_panel @ h) @ W).
    ah = jnp.dot(a_ref[...], h_cur[...], preferred_element_type=jnp.float32)
    tt = jnp.dot(ah.astype(jnp.bfloat16), w_ref[0],
                 preferred_element_type=jnp.float32)
    h = jnp.maximum((tt + b_ref[0]) * sn_ref[...] + shift_ref[0], 0.0)
    res = jnp.where(l == n_layers - 1, res_last, res_mid)
    h_prev = h_cur[pl.ds(row0, tile_rows), :].astype(jnp.float32)
    h_new = h + h_prev * res
    h_nxt[pl.ds(row0, tile_rows), :] = h_new.astype(h_nxt.dtype)

    # publish h_nxt -> h_cur once a (non-final) layer is complete
    @pl.when(jnp.logical_and(t == n_tiles - 1, l < n_layers - 1))
    def _publish():
        h_cur[...] = h_nxt[...]

    # final layer: accumulate the mean readout tile by tile, then MLPReadout
    @pl.when(jnp.logical_and(l == n_layers - 1, t == 0))
    def _zero_acc():
        racc[...] = jnp.zeros_like(racc)

    @pl.when(l == n_layers - 1)
    def _accumulate():
        racc[...] += jnp.dot(rmat_ref[...], h_new.astype(jnp.bfloat16),
                             preferred_element_type=jnp.float32)

    @pl.when(jnp.logical_and(l == n_layers - 1, t == n_tiles - 1))
    def _head():
        logits_ref[...] = _mlp_head(racc[...], mlpw_ref, mlpb_ref,
                                    n_mlp=n_mlp, f_gcn=f_gcn, f_mlp=f_mlp)


# ---------------------------------------------------------------------------
# Host-side parameter prep: eval-mode BatchNorm folded into GraphConv W / b.
# ---------------------------------------------------------------------------
def _fold_and_pad_params(params, bn_eps, F, Fi, Fm):
    def pad2(w, rows, cols):
        return jnp.pad(w, ((0, rows - w.shape[0]), (0, cols - w.shape[1])))

    def padv(v, cols):
        return jnp.pad(v, (0, cols - v.shape[0])).reshape(1, cols)

    w_list = [pad2(params["embed_w"], F, F)]
    b_list = [padv(params["embed_b"], F)]
    s_list = [jnp.zeros((1, F), jnp.float32)]
    for lp in params["layers"]:
        scale = lp["bn_gamma"] * jax.lax.rsqrt(lp["bn_var"] + bn_eps)
        shift = lp["bn_beta"] - lp["bn_mean"] * scale
        w_list.append(pad2(lp["w"] * scale[None, :], F, F))
        b_list.append(padv(lp["b"] * scale, F))
        s_list.append(padv(shift, F))

    w_stack = jnp.stack(w_list).astype(jnp.bfloat16)          # (L+1, F, F)
    b_stack = jnp.stack(b_list).astype(jnp.float32)           # (L+1, 1, F)
    shift_stack = jnp.stack(s_list).astype(jnp.float32)       # (L+1, 1, F)
    mlpw = jnp.stack([pad2(m["w"], Fi, Fm)
                      for m in params["mlp"]]).astype(jnp.bfloat16)
    mlpb = jnp.stack([padv(m["b"], Fm)
                      for m in params["mlp"]]).astype(jnp.float32)
    return w_stack, b_stack, shift_stack, mlpw, mlpb


# ---------------------------------------------------------------------------
# Forward wrapper
# ---------------------------------------------------------------------------
def gcn_net_forward(params, a_hat, nodes_feat, snorm_n, readout_mat, *,
                    n_classes, residual=True, bn_eps=1e-5,
                    force_path=None, tile_rows=None):
    """Eval-mode GCNNet forward.  The batched DGL graph is represented densely:
    a_hat is the block-diagonal D^-1/2 A D^-1/2 and readout_mat the [G, N]
    mean-readout matrix (edges_feat / edges_num_norm_sqrt are unused, as in the
    reference)."""
    N, in_dim = nodes_feat.shape
    G = readout_mat.shape[0]
    L = len(params["layers"])
    n_mlp = len(params["mlp"])

    # Lane-aligned widths.  F covers the GCN trunk (so hidden=146 pads to 256),
    # Fm only the (smaller) MLPReadout widths -> the MLP head is not inflated.
    gcn_dims = ([in_dim, params["embed_w"].shape[1]]
                + [lp["w"].shape[1] for lp in params["layers"]])
    mlp_out_dims = [m["w"].shape[1] for m in params["mlp"]]
    F = _round_up(max(gcn_dims), LANE)
    Fm = _round_up(max(mlp_out_dims + [n_classes]), LANE)
    Fi = max(F, Fm)
    Gp = _round_up(G, SUBLANE)

    w_stack, b_stack, shift_stack, mlpw, mlpb = _fold_and_pad_params(
        params, bn_eps, F, Fi, Fm)

    # residual flags (reference GCNLayer drops residual when in_dim != out_dim)
    last_w = params["layers"][-1]["w"]
    res_mid = bool(residual)
    res_last = bool(residual and last_w.shape[0] == last_w.shape[1])
    res_flags = tuple([res_mid] * (L - 1) + [res_last])

    # ---- generation-aware VMEM budget (v5e/v6e 128 MiB, v7x 64 MiB) --------
    usable = (_vmem_capacity_bytes() * 3) // 4       # leave headroom for Mosaic

    def resident_bytes(np_):
        return int(np_ * np_ * 2                     # A_hat bf16, single buffer
                   + np_ * F * 2                     # x / h (bf16)
                   + np_ * 512                       # snorm (Np,1) f32, lane pad
                   + (L + 1) * (F * F * 2 + 2 * SUBLANE * F * 4)
                   + Gp * np_ * 2                    # readout matrix
                   + n_mlp * (Fi * Fm * 2 + SUBLANE * Fm * 4)
                   + 2 * Gp * Fm * 4                 # logits
                   + 6 * np_ * F * 4)                # in-kernel f32 temporaries

    def tiled_bytes(np_, t_rows):
        return int(2 * np_ * F * 2                   # h ping-pong (bf16)
                   + 2 * t_rows * np_ * 2            # A row panel, double-buffer
                   + 2 * t_rows * 512                # snorm tile
                   + 2 * Gp * t_rows * 2             # readout tile
                   + 2 * (F * F * 2 + 2 * SUBLANE * F * 4)
                   + 2 * (n_mlp * Fi * Fm * 2 + n_mlp * SUBLANE * Fm * 4)
                   + Gp * F * 4 + 2 * Gp * Fm * 4
                   + np_ * F * 2                     # full-h matmul operand
                   + 6 * t_rows * F * 4)             # per-tile f32 temporaries

    Np_r = _round_up(N, LANE)
    est_resident = resident_bytes(Np_r)

    if force_path is None:
        if est_resident <= usable:
            # streamed weights only pay off once the (L+1)*F*F stack is large;
            # otherwise a single un-gridded invocation avoids the per-step grid
            # overhead (the kernel is overhead-bound at small N).
            big_stack = (L + 1) * F * F * 2 > (4 << 20) or L > 16
            path = "streamed" if big_stack else "unrolled"
        else:
            path = "tiled"
    else:
        path = force_path
    if path not in ("unrolled", "streamed", "tiled"):
        raise ValueError(f"unknown path {path!r}")
    if path in ("unrolled", "streamed") and est_resident > usable:
        raise ValueError(
            f"graph too large for a resident A_hat "
            f"(~{est_resident / 2**20:.1f} MiB > {usable / 2**20:.1f} MiB); "
            f"use the row-tiled path")

    def pad_nodes(np_):
        x_p = jnp.pad(nodes_feat,
                      ((0, np_ - N), (0, F - in_dim))).astype(jnp.bfloat16)
        a_p = jnp.pad(a_hat, ((0, np_ - N), (0, np_ - N))).astype(jnp.bfloat16)
        sn_p = jnp.pad(snorm_n, ((0, np_ - N), (0, 0))).astype(jnp.float32)
        r_p = jnp.pad(readout_mat,
                      ((0, Gp - G), (0, np_ - N))).astype(jnp.bfloat16)
        return x_p, a_p, sn_p, r_p

    def cost(np_, a_reads):
        flops = 2 * (np_ * F * F + L * (np_ * F * F + np_ * np_ * F)
                     + Gp * np_ * F + n_mlp * Gp * Fi * Fm)
        byts = (np_ * F * 2 + a_reads * np_ * np_ * 2 + np_ * 4
                + (L + 1) * F * F * 2 + Gp * np_ * 2
                + n_mlp * Fi * Fm * 2 + Gp * Fm * 4)
        return pl.CostEstimate(flops=int(flops), transcendentals=0,
                               bytes_accessed=int(byts))

    out_shape = jax.ShapeDtypeStruct((Gp, Fm), jnp.float32)

    # -------------------------------------------------------------------- #
    if path == "unrolled":
        Np = Np_r
        x_p, a_p, sn_p, r_p = pad_nodes(Np)
        vmem_limit = min(usable, max(32 << 20, est_resident + (4 << 20)))
        kernel = functools.partial(
            _gcn_unrolled_kernel, n_layers=L, n_mlp=n_mlp, res_flags=res_flags,
            f_gcn=F, f_mlp=Fm)
        vmem = pltpu.MemorySpace.VMEM
        logits = pl.pallas_call(
            kernel,
            out_shape=out_shape,
            in_specs=[pl.BlockSpec(memory_space=vmem)] * 9,
            out_specs=pl.BlockSpec(memory_space=vmem),
            compiler_params=pltpu.CompilerParams(vmem_limit_bytes=vmem_limit),
            cost_estimate=cost(Np, a_reads=1),
        )(x_p, a_p, sn_p, w_stack, b_stack, shift_stack, r_p, mlpw, mlpb)

    # -------------------------------------------------------------------- #
    elif path == "streamed":
        Np = Np_r
        x_p, a_p, sn_p, r_p = pad_nodes(Np)
        vmem_limit = min(usable, max(32 << 20, est_resident + (4 << 20)))
        kernel = functools.partial(
            _gcn_streamed_kernel, res_mid=float(res_mid),
            res_last=float(res_last), n_mlp=n_mlp, f_gcn=F, f_mlp=Fm)
        grid_spec = pltpu.PrefetchScalarGridSpec(
            num_scalar_prefetch=0,
            grid=(L + 1,),
            in_specs=[
                pl.BlockSpec(memory_space=pl.ANY),              # x (copied once)
                pl.BlockSpec(memory_space=pl.ANY),              # A_hat (once)
                pl.BlockSpec((Np, 1), lambda l: (0, 0)),        # snorm (resident)
                pl.BlockSpec((1, F, F), lambda l: (l, 0, 0)),   # W_l   (streamed)
                pl.BlockSpec((1, 1, F), lambda l: (l, 0, 0)),   # b_l   (streamed)
                pl.BlockSpec((1, 1, F), lambda l: (l, 0, 0)),   # shift (streamed)
                pl.BlockSpec(memory_space=pl.ANY),              # rmat (last step)
                pl.BlockSpec(memory_space=pl.ANY),              # MLP W (last step)
                pl.BlockSpec(memory_space=pl.ANY),              # MLP b (last step)
            ],
            out_specs=pl.BlockSpec((Gp, Fm), lambda l: (0, 0)),
            scratch_shapes=[
                pltpu.VMEM((Np, F), jnp.bfloat16),     # h (bf16 -> half the vst)
                pltpu.VMEM((Np, Np), jnp.bfloat16),    # A_hat, single-buffered
                pltpu.VMEM((Gp, Np), jnp.bfloat16),    # readout matrix
                pltpu.VMEM((n_mlp, Fi, Fm), jnp.bfloat16),
                pltpu.VMEM((n_mlp, 1, Fm), jnp.float32),
            ],
        )
        logits = pl.pallas_call(
            kernel,
            out_shape=out_shape,
            grid_spec=grid_spec,
            compiler_params=pltpu.CompilerParams(
                dimension_semantics=("arbitrary",),    # layers are sequential
                vmem_limit_bytes=vmem_limit),
            cost_estimate=cost(Np, a_reads=1),
        )(x_p, a_p, sn_p, w_stack, b_stack, shift_stack, r_p, mlpw, mlpb)

    # -------------------------------------------------------------------- #
    else:  # "tiled"
        if tile_rows is None:
            T, Np = None, None
            for cand in (512, 256, 128):
                np_c = _round_up(max(N, cand), cand)
                if tiled_bytes(np_c, cand) <= usable:
                    T, Np = cand, np_c
                    break
            if T is None:
                raise ValueError("graph too large even for the row-tiled path")
        else:
            T = int(tile_rows)
            assert T % LANE == 0, "tile_rows must be a multiple of 128"
            Np = _round_up(max(N, T), T)
        n_tiles = Np // T
        est_tiled = tiled_bytes(Np, T)
        if est_tiled > usable:
            raise ValueError(
                f"row-tiled path does not fit VMEM "
                f"(~{est_tiled / 2**20:.1f} MiB > {usable / 2**20:.1f} MiB)")
        vmem_limit = min(usable, max(32 << 20, est_tiled + (4 << 20)))

        # embedding_h hoisted to XLA: x would only feed grid step 0 but would
        # otherwise stay resident in VMEM for the whole grid.
        h0 = nodes_feat @ params["embed_w"] + params["embed_b"]
        h0_p = jnp.pad(h0, ((0, Np - N),
                            (0, F - h0.shape[1]))).astype(jnp.bfloat16)
        _, a_p, sn_p, r_p = pad_nodes(Np)

        kernel = functools.partial(
            _gcn_tiled_kernel, res_mid=float(res_mid), res_last=float(res_last),
            n_mlp=n_mlp, tile_rows=T, f_gcn=F, f_mlp=Fm)
        grid_spec = pltpu.PrefetchScalarGridSpec(
            num_scalar_prefetch=0,
            grid=(L, n_tiles),
            in_specs=[
                pl.BlockSpec(memory_space=pl.ANY),                    # h0
                pl.BlockSpec((T, Np), lambda l, t: (t, 0)),           # A row panel
                pl.BlockSpec((T, 1), lambda l, t: (t, 0)),            # snorm tile
                pl.BlockSpec((1, F, F), lambda l, t: (l, 0, 0)),      # W_l
                pl.BlockSpec((1, 1, F), lambda l, t: (l, 0, 0)),      # b_l
                pl.BlockSpec((1, 1, F), lambda l, t: (l, 0, 0)),      # shift_l
                pl.BlockSpec((Gp, T), lambda l, t: (0, t)),           # readout tile
                pl.BlockSpec((n_mlp, Fi, Fm), lambda l, t: (0, 0, 0)),
                pl.BlockSpec((n_mlp, 1, Fm), lambda l, t: (0, 0, 0)),
            ],
            out_specs=pl.BlockSpec((Gp, Fm), lambda l, t: (0, 0)),
            scratch_shapes=[
                pltpu.VMEM((Np, F), jnp.bfloat16),      # h (layer input)
                pltpu.VMEM((Np, F), jnp.bfloat16),      # h (layer output)
                pltpu.VMEM((Gp, F), jnp.float32),       # readout accumulator
            ],
        )
        logits = pl.pallas_call(
            kernel,
            out_shape=out_shape,
            grid_spec=grid_spec,
            compiler_params=pltpu.CompilerParams(
                dimension_semantics=("arbitrary", "arbitrary"),
                vmem_limit_bytes=vmem_limit),
            cost_estimate=cost(Np, a_reads=L),
        )(h0_p, a_p, sn_p, w_stack[1:], b_stack[1:], shift_stack[1:],
          r_p, mlpw, mlpb)

    return logits[:G, :n_classes]


# ---------------------------------------------------------------------------
# Pure-JAX f32 reference (eval-mode GCNNet.forward) for tolerance checks.
# ---------------------------------------------------------------------------
def reference_forward(params, a_hat, nodes_feat, snorm_n, readout_mat, *,
                      residual=True, bn_eps=1e-5):
    h = nodes_feat @ params["embed_w"] + params["embed_b"]
    for lp in params["layers"]:
        h_in = h
        h = a_hat @ (h @ lp["w"]) + lp["b"]           # GraphConv, norm='both'
        h = h * snorm_n                               # graph_norm
        h = ((h - lp["bn_mean"]) * jax.lax.rsqrt(lp["bn_var"] + bn_eps)
             * lp["bn_gamma"] + lp["bn_beta"])        # BatchNorm1d (eval)
        h = jax.nn.relu(h)
        if residual and h_in.shape[1] == h.shape[1]:
            h = h + h_in
    y = readout_mat @ h                               # mean readout
    n_mlp = len(params["mlp"])
    for i, m in enumerate(params["mlp"]):
        y = y @ m["w"] + m["b"]
        if i < n_mlp - 1:
            y = jax.nn.relu(y)
    return y


# ---------------------------------------------------------------------------
# Deterministic parameter / graph construction
# ---------------------------------------------------------------------------
def init_params(key, in_dim, hidden_dim, out_dim, n_classes, L):
    def lin(k, fan_in, fan_out):
        kw, kb = jax.random.split(k)
        s = 1.0 / (fan_in ** 0.5)
        w = jax.random.uniform(kw, (fan_in, fan_out), jnp.float32, -s, s)
        b = jax.random.uniform(kb, (fan_out,), jnp.float32, -s, s)
        return w, b

    keys = jax.random.split(key, 2 * L + 4)
    ki = iter(keys)

    params = {"layers": [], "mlp": []}
    params["embed_w"], params["embed_b"] = lin(next(ki), in_dim, hidden_dim)

    layer_dims = [(hidden_dim, hidden_dim)] * (L - 1) + [(hidden_dim, out_dim)]
    for (i, o) in layer_dims:
        w, b = lin(next(ki), i, o)
        kg, kb2, km, kv = jax.random.split(next(ki), 4)
        params["layers"].append({
            "w": w, "b": b,
            # non-trivial running stats so BN folding is actually exercised
            "bn_gamma": jax.random.uniform(kg, (o,), jnp.float32, 0.5, 1.5),
            "bn_beta": 0.1 * jax.random.normal(kb2, (o,), jnp.float32),
            "bn_mean": 0.1 * jax.random.normal(km, (o,), jnp.float32),
            "bn_var": jax.random.uniform(kv, (o,), jnp.float32, 0.5, 1.5),
        })

    mlp_dims = [(out_dim, out_dim // 2), (out_dim // 2, out_dim // 4),
                (out_dim // 4, n_classes)]
    for (i, o) in mlp_dims:
        w, b = lin(next(ki), i, o)
        params["mlp"].append({"w": w, "b": b})
    return params


def build_batched_graph(key, graph_sizes, in_dim):
    """Block-diagonal symmetric adjacency, DGL 'both' norm, per-node 1/sqrt(n)
    graph-size norm and a dense [G, N] mean-readout matrix."""
    N, G = sum(graph_sizes), len(graph_sizes)
    k_feat, k_adj = jax.random.split(key)
    nodes_feat = jax.random.normal(k_feat, (N, in_dim), jnp.float32)
    a = jnp.zeros((N, N), jnp.float32)
    adj_keys = jax.random.split(k_adj, G)
    snorm_rows, readout_rows = [], []
    off = 0
    for g, n_g in enumerate(graph_sizes):
        sub = (jax.random.uniform(adj_keys[g], (n_g, n_g)) < 0.4).astype(jnp.float32)
        sub = jnp.maximum(sub, sub.T) * (1.0 - jnp.eye(n_g, dtype=jnp.float32))
        a = a.at[off:off + n_g, off:off + n_g].set(sub)
        snorm_rows.append(jnp.full((n_g, 1), 1.0 / (n_g ** 0.5), jnp.float32))
        readout_rows.append(
            jnp.zeros((N,), jnp.float32).at[off:off + n_g].set(1.0 / n_g))
        off += n_g
    # zero-degree nodes get degree clamped to 1 (DGL norm='both' would raise
    # unless allow_zero_in_degree=True); numerically benign.
    deg = jnp.clip(a.sum(axis=1), 1.0, None)
    dinv = 1.0 / jnp.sqrt(deg)
    a_hat = a * dinv[:, None] * dinv[None, :]
    snorm_n = jnp.concatenate(snorm_rows, axis=0)
    readout_mat = jnp.stack(readout_rows, axis=0)
    return a_hat, nodes_feat, snorm_n, readout_mat


# ---------------------------------------------------------------------------
if __name__ == "__main__":
    key = jax.random.PRNGKey(0)
    in_dim, hidden_dim, out_dim, n_classes, L = 16, 64, 64, 8, 4

    k_par, k_g1, k_g2 = jax.random.split(key, 3)
    params = init_params(k_par, in_dim, hidden_dim, out_dim, n_classes, L)

    # --- batched graph #1: 2 small graphs, 32 nodes (auto -> unrolled path) --
    a1, x1, s1, r1 = build_batched_graph(k_g1, [12, 20], in_dim)
    fwd = jax.jit(functools.partial(gcn_net_forward,
                                    n_classes=n_classes, residual=True))
    logits = fwd(params, a1, x1, s1, r1)
    jax.block_until_ready(logits)
    assert logits.shape == (2, n_classes) and logits.dtype == jnp.float32
    ref1 = reference_forward(params, a1, x1, s1, r1, residual=True)
    assert float(jnp.max(jnp.abs(logits - ref1))) < 0.15

    # --- batched graph #2: 160 nodes -- exercise the streamed and row-tiled
    #     paths as well and cross-check everything against the f32 reference --
    a2, x2, s2, r2 = build_batched_graph(k_g2, [70, 90], in_dim)
    ref2 = reference_forward(params, a2, x2, s2, r2, residual=True)
    for path, extra in (("unrolled", {}), ("streamed", {}),
                        ("tiled", {"tile_rows": 128})):
        f = jax.jit(functools.partial(gcn_net_forward, n_classes=n_classes,
                                      residual=True, force_path=path, **extra))
        out = f(params, a2, x2, s2, r2)
        jax.block_until_ready(out)
        assert out.shape == (2, n_classes), path
        assert float(jnp.max(jnp.abs(out - ref2))) < 0.15, path

    print("KERNEL_OK")
</pallas_src>

<mosaic_0001>
module attributes {stable_mosaic.version = 11 : i64} {
  func.func @_gcn_unrolled_kernel(%arg0: memref<128x128xbf16, #tpu.memory_space<vmem>>, %arg1: memref<128x128xbf16, #tpu.memory_space<vmem>>, %arg2: memref<128x1xf32, #tpu.memory_space<vmem>>, %arg3: memref<5x128x128xbf16, #tpu.memory_space<vmem>>, %arg4: memref<5x1x128xf32, #tpu.memory_space<vmem>>, %arg5: memref<5x1x128xf32, #tpu.memory_space<vmem>>, %arg6: memref<8x128xbf16, #tpu.memory_space<vmem>>, %arg7: memref<3x128x128xbf16, #tpu.memory_space<vmem>>, %arg8: memref<3x1x128xf32, #tpu.memory_space<vmem>>, %arg9: memref<8x128xf32, #tpu.memory_space<vmem>>) attributes {dimension_semantics = [], scalar_prefetch = 0 : i64, scratch_operands = 0 : i64, tpu.core_type = #tpu.core_type<tc>} {
    %c0 = arith.constant 0 : index
    %c0_0 = arith.constant 0 : index
    %0 = vector.load %arg1[%c0, %c0_0] : memref<128x128xbf16, #tpu.memory_space<vmem>>, vector<128x128xbf16>
    %c0_1 = arith.constant 0 : index
    %c0_2 = arith.constant 0 : index
    %1 = vector.load %arg2[%c0_1, %c0_2] : memref<128x1xf32, #tpu.memory_space<vmem>>, vector<128x1xf32>
    %c0_3 = arith.constant 0 : index
    %c0_4 = arith.constant 0 : index
    %2 = vector.load %arg0[%c0_3, %c0_4] : memref<128x128xbf16, #tpu.memory_space<vmem>>, vector<128x128xbf16>
    %c0_5 = arith.constant 0 : index
    %c0_6 = arith.constant 0 : index
    %c0_7 = arith.constant 0 : index
    %3 = vector.load %arg3[%c0_5, %c0_6, %c0_7] : memref<5x128x128xbf16, #tpu.memory_space<vmem>>, vector<1x128x128xbf16>
    %4 = vector.shape_cast %3 : vector<1x128x128xbf16> to vector<128x128xbf16>
    %cst = arith.constant dense<0.000000e+00> : vector<128x128xf32>
    %5 = tpu.matmul %2, %4, %cst {dimension_numbers = #tpu.dot_dimension_numbers<[1], [0], [0], [1], [0, 0, 1, 1], [], []>} : vector<128x128xbf16>, vector<128x128xbf16>, vector<128x128xf32> -> vector<128x128xf32>
    %c0_8 = arith.constant 0 : index
    %c0_9 = arith.constant 0 : index
    %c0_10 = arith.constant 0 : index
    %6 = vector.load %arg4[%c0_8, %c0_9, %c0_10] : memref<5x1x128xf32, #tpu.memory_space<vmem>>, vector<1x1x128xf32>
    %7 = vector.shape_cast %6 : vector<1x1x128xf32> to vector<1x128xf32>
    %8 = vector.broadcast %7 : vector<1x128xf32> to vector<128x128xf32>
    %9 = arith.addf %5, %8 : vector<128x128xf32>
    %c1 = arith.constant 1 : index
    %c0_11 = arith.constant 0 : index
    %c0_12 = arith.constant 0 : index
    %10 = vector.load %arg3[%c1, %c0_11, %c0_12] : memref<5x128x128xbf16, #tpu.memory_space<vmem>>, vector<1x128x128xbf16>
    %11 = vector.shape_cast %10 : vector<1x128x128xbf16> to vector<128x128xbf16>
    %c1_13 = arith.constant 1 : index
    %c0_14 = arith.constant 0 : index
    %c0_15 = arith.constant 0 : index
    %12 = vector.load %arg4[%c1_13, %c0_14, %c0_15] : memref<5x1x128xf32, #tpu.memory_space<vmem>>, vector<1x1x128xf32>
    %13 = vector.shape_cast %12 : vector<1x1x128xf32> to vector<1x128xf32>
    %c1_16 = arith.constant 1 : index
    %c0_17 = arith.constant 0 : index
    %c0_18 = arith.constant 0 : index
    %14 = vector.load %arg5[%c1_16, %c0_17, %c0_18] : memref<5x1x128xf32, #tpu.memory_space<vmem>>, vector<1x1x128xf32>
    %15 = vector.shape_cast %14 : vector<1x1x128xf32> to vector<1x128xf32>
    %16 = arith.truncf %9 : vector<128x128xf32> to vector<128x128xbf16>
    %cst_19 = arith.constant dense<0.000000e+00> : vector<128x128xf32>
    %17 = tpu.matmul %16, %11, %cst_19 {dimension_numbers = #tpu.dot_dimension_numbers<[1], [0], [0], [1], [0, 0, 1, 1], [], []>} : vector<128x128xbf16>, vector<128x128xbf16>, vector<128x128xf32> -> vector<128x128xf32>
    %18 = arith.truncf %17 : vector<128x128xf32> to vector<128x128xbf16>
    %cst_20 = arith.constant dense<0.000000e+00> : vector<128x128xf32>
    %19 = tpu.matmul %0, %18, %cst_20 {dimension_numbers = #tpu.dot_dimension_numbers<[1], [0], [0], [1], [0, 0, 1, 1], [], []>} : vector<128x128xbf16>, vector<128x128xbf16>, vector<128x128xf32> -> vector<128x128xf32>
    %20 = vector.broadcast %13 : vector<1x128xf32> to vector<128x128xf32>
    %21 = arith.addf %19, %20 : vector<128x128xf32>
    %22 = vector.broadcast %1 : vector<128x1xf32> to vector<128x128xf32>
    %23 = arith.mulf %21, %22 : vector<128x128xf32>
    %24 = vector.broadcast %15 : vector<1x128xf32> to vector<128x128xf32>
    %25 = arith.addf %23, %24 : vector<128x128xf32>
    %cst_21 = arith.constant 0.000000e+00 : f32
    %26 = vector.broadcast %cst_21 : f32 to vector<128x128xf32>
    %27 = arith.maximumf %25, %26 : vector<128x128xf32>
    %28 = arith.addf %27, %9 : vector<128x128xf32>
    %c2 = arith.constant 2 : index
    %c0_22 = arith.constant 0 : index
    %c0_23 = arith.constant 0 : index
    %29 = vector.load %arg3[%c2, %c0_22, %c0_23] : memref<5x128x128xbf16, #tpu.memory_space<vmem>>, vector<1x128x128xbf16>
    %30 = vector.shape_cast %29 : vector<1x128x128xbf16> to vector<128x128xbf16>
    %c2_24 = arith.constant 2 : index
    %c0_25 = arith.constant 0 : index
    %c0_26 = arith.constant 0 : index
    %31 = vector.load %arg4[%c2_24, %c0_25, %c0_26] : memref<5x1x128xf32, #tpu.memory_space<vmem>>, vector<1x1x128xf32>
    %32 = vector.shape_cast %31 : vector<1x1x128xf32> to vector<1x128xf32>
    %c2_27 = arith.constant 2 : index
    %c0_28 = arith.constant 0 : index
    %c0_29 = arith.constant 0 : index
    %33 = vector.load %arg5[%c2_27, %c0_28, %c0_29] : memref<5x1x128xf32, #tpu.memory_space<vmem>>, vector<1x1x128xf32>
    %34 = vector.shape_cast %33 : vector<1x1x128xf32> to vector<1x128xf32>
    %35 = arith.truncf %28 : vector<128x128xf32> to vector<128x128xbf16>
    %cst_30 = arith.constant dense<0.000000e+00> : vector<128x128xf32>
    %36 = tpu.matmul %35, %30, %cst_30 {dimension_numbers = #tpu.dot_dimension_numbers<[1], [0], [0], [1], [0, 0, 1, 1], [], []>} : vector<128x128xbf16>, vector<128x128xbf16>, vector<128x128xf32> -> vector<128x128xf32>
    %37 = arith.truncf %36 : vector<128x128xf32> to vector<128x128xbf16>
    %cst_31 = arith.constant dense<0.000000e+00> : vector<128x128xf32>
    %38 = tpu.matmul %0, %37, %cst_31 {dimension_numbers = #tpu.dot_dimension_numbers<[1], [0], [0], [1], [0, 0, 1, 1], [], []>} : vector<128x128xbf16>, vector<128x128xbf16>, vector<128x128xf32> -> vector<128x128xf32>
    %39 = vector.broadcast %32 : vector<1x128xf32> to vector<128x128xf32>
    %40 = arith.addf %38, %39 : vector<128x128xf32>
    %41 = vector.broadcast %1 : vector<128x1xf32> to vector<128x128xf32>
    %42 = arith.mulf %40, %41 : vector<128x128xf32>
    %43 = vector.broadcast %34 : vector<1x128xf32> to vector<128x128xf32>
    %44 = arith.addf %42, %43 : vector<128x128xf32>
    %cst_32 = arith.constant 0.000000e+00 : f32
    %45 = vector.broadcast %cst_32 : f32 to vector<128x128xf32>
    %46 = arith.maximumf %44, %45 : vector<128x128xf32>
    %47 = arith.addf %46, %28 : vector<128x128xf32>
    %c3 = arith.constant 3 : index
    %c0_33 = arith.constant 0 : index
    %c0_34 = arith.constant 0 : index
    %48 = vector.load %arg3[%c3, %c0_33, %c0_34] : memref<5x128x128xbf16, #tpu.memory_space<vmem>>, vector<1x128x128xbf16>
    %49 = vector.shape_cast %48 : vector<1x128x128xbf16> to vector<128x128xbf16>
    %c3_35 = arith.constant 3 : index
    %c0_36 = arith.constant 0 : index
    %c0_37 = arith.constant 0 : index
    %50 = vector.load %arg4[%c3_35, %c0_36, %c0_37] : memref<5x1x128xf32, #tpu.memory_space<vmem>>, vector<1x1x128xf32>
    %51 = vector.shape_cast %50 : vector<1x1x128xf32> to vector<1x128xf32>
    %c3_38 = arith.constant 3 : index
    %c0_39 = arith.constant 0 : index
    %c0_40 = arith.constant 0 : index
    %52 = vector.load %arg5[%c3_38, %c0_39, %c0_40] : memref<5x1x128xf32, #tpu.memory_space<vmem>>, vector<1x1x128xf32>
    %53 = vector.shape_cast %52 : vector<1x1x128xf32> to vector<1x128xf32>
    %54 = arith.truncf %47 : vector<128x128xf32> to vector<128x128xbf16>
    %cst_41 = arith.constant dense<0.000000e+00> : vector<128x128xf32>
    %55 = tpu.matmul %54, %49, %cst_41 {dimension_numbers = #tpu.dot_dimension_numbers<[1], [0], [0], [1], [0, 0, 1, 1], [], []>} : vector<128x128xbf16>, vector<128x128xbf16>, vector<128x128xf32> -> vector<128x128xf32>
    %56 = arith.truncf %55 : vector<128x128xf32> to vector<128x128xbf16>
    %cst_42 = arith.constant dense<0.000000e+00> : vector<128x128xf32>
    %57 = tpu.matmul %0, %56, %cst_42 {dimension_numbers = #tpu.dot_dimension_numbers<[1], [0], [0], [1], [0, 0, 1, 1], [], []>} : vector<128x128xbf16>, vector<128x128xbf16>, vector<128x128xf32> -> vector<128x128xf32>
    %58 = vector.broadcast %51 : vector<1x128xf32> to vector<128x128xf32>
    %59 = arith.addf %57, %58 : vector<128x128xf32>
    %60 = vector.broadcast %1 : vector<128x1xf32> to vector<128x128xf32>
    %61 = arith.mulf %59, %60 : vector<128x128xf32>
    %62 = vector.broadcast %53 : vector<1x128xf32> to vector<128x128xf32>
    %63 = arith.addf %61, %62 : vector<128x128xf32>
    %cst_43 = arith.constant 0.000000e+00 : f32
    %64 = vector.broadcast %cst_43 : f32 to vector<128x128xf32>
    %65 = arith.maximumf %63, %64 : vector<128x128xf32>
    %66 = arith.addf %65, %47 : vector<128x128xf32>
    %c4 = arith.constant 4 : index
    %c0_44 = arith.constant 0 : index
    %c0_45 = arith.constant 0 : index
    %67 = vector.load %arg3[%c4, %c0_44, %c0_45] : memref<5x128x128xbf16, #tpu.memory_space<vmem>>, vector<1x128x128xbf16>
    %68 = vector.shape_cast %67 : vector<1x128x128xbf16> to vector<128x128xbf16>
    %c4_46 = arith.constant 4 : index
    %c0_47 = arith.constant 0 : index
    %c0_48 = arith.constant 0 : index
    %69 = vector.load %arg4[%c4_46, %c0_47, %c0_48] : memref<5x1x128xf32, #tpu.memory_space<vmem>>, vector<1x1x128xf32>
    %70 = vector.shape_cast %69 : vector<1x1x128xf32> to vector<1x128xf32>
    %c4_49 = arith.constant 4 : index
    %c0_50 = arith.constant 0 : index
    %c0_51 = arith.constant 0 : index
    %71 = vector.load %arg5[%c4_49, %c0_50, %c0_51] : memref<5x1x128xf32, #tpu.memory_space<vmem>>, vector<1x1x128xf32>
    %72 = vector.shape_cast %71 : vector<1x1x128xf32> to vector<1x128xf32>
    %73 = arith.truncf %66 : vector<128x128xf32> to vector<128x128xbf16>
    %cst_52 = arith.constant dense<0.000000e+00> : vector<128x128xf32>
    %74 = tpu.matmul %73, %68, %cst_52 {dimension_numbers = #tpu.dot_dimension_numbers<[1], [0], [0], [1], [0, 0, 1, 1], [], []>} : vector<128x128xbf16>, vector<128x128xbf16>, vector<128x128xf32> -> vector<128x128xf32>
    %75 = arith.truncf %74 : vector<128x128xf32> to vector<128x128xbf16>
    %cst_53 = arith.constant dense<0.000000e+00> : vector<128x128xf32>
    %76 = tpu.matmul %0, %75, %cst_53 {dimension_numbers = #tpu.dot_dimension_numbers<[1], [0], [0], [1], [0, 0, 1, 1], [], []>} : vector<128x128xbf16>, vector<128x128xbf16>, vector<128x128xf32> -> vector<128x128xf32>
    %77 = vector.broadcast %70 : vector<1x128xf32> to vector<128x128xf32>
    %78 = arith.addf %76, %77 : vector<128x128xf32>
    %79 = vector.broadcast %1 : vector<128x1xf32> to vector<128x128xf32>
    %80 = arith.mulf %78, %79 : vector<128x128xf32>
    %81 = vector.broadcast %72 : vector<1x128xf32> to vector<128x128xf32>
    %82 = arith.addf %80, %81 : vector<128x128xf32>
    %cst_54 = arith.constant 0.000000e+00 : f32
    %83 = vector.broadcast %cst_54 : f32 to vector<128x128xf32>
    %84 = arith.maximumf %82, %83 : vector<128x128xf32>
    %85 = arith.addf %84, %66 : vector<128x128xf32>
    %c0_55 = arith.constant 0 : index
    %c0_56 = arith.constant 0 : index
    %86 = vector.load %arg6[%c0_55, %c0_56] : memref<8x128xbf16, #tpu.memory_space<vmem>>, vector<8x128xbf16>
    %87 = arith.truncf %85 : vector<128x128xf32> to vector<128x128xbf16>
    %cst_57 = arith.constant dense<0.000000e+00> : vector<8x128xf32>
    %88 = tpu.matmul %86, %87, %cst_57 {dimension_numbers = #tpu.dot_dimension_numbers<[1], [0], [0], [1], [0, 0, 1, 1], [], []>} : vector<8x128xbf16>, vector<128x128xbf16>, vector<8x128xf32> -> vector<8x128xf32>
    %89 = arith.truncf %88 : vector<8x128xf32> to vector<8x128xbf16>
    %c0_58 = arith.constant 0 : index
    %c0_59 = arith.constant 0 : index
    %c0_60 = arith.constant 0 : index
    %90 = vector.load %arg7[%c0_58, %c0_59, %c0_60] : memref<3x128x128xbf16, #tpu.memory_space<vmem>>, vector<1x128x128xbf16>
    %91 = vector.shape_cast %90 : vector<1x128x128xbf16> to vector<128x128xbf16>
    %cst_61 = arith.constant dense<0.000000e+00> : vector<8x128xf32>
    %92 = tpu.matmul %89, %91, %cst_61 {dimension_numbers = #tpu.dot_dimension_numbers<[1], [0], [0], [1], [0, 0, 1, 1], [], []>} : vector<8x128xbf16>, vector<128x128xbf16>, vector<8x128xf32> -> vector<8x128xf32>
    %c0_62 = arith.constant 0 : index
    %c0_63 = arith.constant 0 : index
    %c0_64 = arith.constant 0 : index
    %93 = vector.load %arg8[%c0_62, %c0_63, %c0_64] : memref<3x1x128xf32, #tpu.memory_space<vmem>>, vector<1x1x128xf32>
    %94 = vector.shape_cast %93 : vector<1x1x128xf32> to vector<1x128xf32>
    %95 = vector.broadcast %94 : vector<1x128xf32> to vector<8x128xf32>
    %96 = arith.addf %92, %95 : vector<8x128xf32>
    %cst_65 = arith.constant 0.000000e+00 : f32
    %97 = vector.broadcast %cst_65 : f32 to vector<8x128xf32>
    %98 = arith.maximumf %96, %97 : vector<8x128xf32>
    %99 = arith.truncf %98 : vector<8x128xf32> to vector<8x128xbf16>
    %c1_66 = arith.constant 1 : index
    %c0_67 = arith.constant 0 : index
    %c0_68 = arith.constant 0 : index
    %100 = vector.load %arg7[%c1_66, %c0_67, %c0_68] : memref<3x128x128xbf16, #tpu.memory_space<vmem>>, vector<1x128x128xbf16>
    %101 = vector.shape_cast %100 : vector<1x128x128xbf16> to vector<128x128xbf16>
    %cst_69 = arith.constant dense<0.000000e+00> : vector<8x128xf32>
    %102 = tpu.matmul %99, %101, %cst_69 {dimension_numbers = #tpu.dot_dimension_numbers<[1], [0], [0], [1], [0, 0, 1, 1], [], []>} : vector<8x128xbf16>, vector<128x128xbf16>, vector<8x128xf32> -> vector<8x128xf32>
    %c1_70 = arith.constant 1 : index
    %c0_71 = arith.constant 0 : index
    %c0_72 = arith.constant 0 : index
    %103 = vector.load %arg8[%c1_70, %c0_71, %c0_72] : memref<3x1x128xf32, #tpu.memory_space<vmem>>, vector<1x1x128xf32>
    %104 = vector.shape_cast %103 : vector<1x1x128xf32> to vector<1x128xf32>
    %105 = vector.broadcast %104 : vector<1x128xf32> to vector<8x128xf32>
    %106 = arith.addf %102, %105 : vector<8x128xf32>
    %cst_73 = arith.constant 0.000000e+00 : f32
    %107 = vector.broadcast %cst_73 : f32 to vector<8x128xf32>
    %108 = arith.maximumf %106, %107 : vector<8x128xf32>
    %109 = arith.truncf %108 : vector<8x128xf32> to vector<8x128xbf16>
    %c2_74 = arith.constant 2 : index
    %c0_75 = arith.constant 0 : index
    %c0_76 = arith.constant 0 : index
    %110 = vector.load %arg7[%c2_74, %c0_75, %c0_76] : memref<3x128x128xbf16, #tpu.memory_space<vmem>>, vector<1x128x128xbf16>
    %111 = vector.shape_cast %110 : vector<1x128x128xbf16> to vector<128x128xbf16>
    %cst_77 = arith.constant dense<0.000000e+00> : vector<8x128xf32>
    %112 = tpu.matmul %109, %111, %cst_77 {dimension_numbers = #tpu.dot_dimension_numbers<[1], [0], [0], [1], [0, 0, 1, 1], [], []>} : vector<8x128xbf16>, vector<128x128xbf16>, vector<8x128xf32> -> vector<8x128xf32>
    %c2_78 = arith.constant 2 : index
    %c0_79 = arith.constant 0 : index
    %c0_80 = arith.constant 0 : index
    %113 = vector.load %arg8[%c2_78, %c0_79, %c0_80] : memref<3x1x128xf32, #tpu.memory_space<vmem>>, vector<1x1x128xf32>
    %114 = vector.shape_cast %113 : vector<1x1x128xf32> to vector<1x128xf32>
    %115 = vector.broadcast %114 : vector<1x128xf32> to vector<8x128xf32>
    %116 = arith.addf %112, %115 : vector<8x128xf32>
    %c0_81 = arith.constant 0 : index
    %c0_82 = arith.constant 0 : index
    %117 = vector.load %arg9[%c0_81, %c0_82] : memref<8x128xf32, #tpu.memory_space<vmem>>, vector<8x128xf32>
    tpu.vector_store %arg9[%c0_81, %c0_82], %116 {strides = array<i32>} : memref<8x128xf32, #tpu.memory_space<vmem>>, vector<8x128xf32>,
    return
  }
}

</mosaic_0001>

<bundles_post_ra>
// kernel: mul.34
= control target key start
LH: loop header
LB: loop body
LE: loop exit
PB: predicated region body
PF: predicated region fallthrough
CT: control target
= control target key end

     0   :  { %s34_s0 = inlined_call_operand.vmem [shape: f32[64], index: 0, kind: input, shape index: {}]   ;;  %s35_s1 = inlined_call_operand.vmem [shape: f32[64], index: 1, kind: input, shape index: {}]   ;;  %s36_s2 = inlined_call_operand.vmem [shape: f32[64], index: 2, kind: output, shape index: {}]  }
   0x1   :  { %v3_v0 = vld [vmem:[%s34_s0] sm:$0x1] }
   0x2   :  { %v4_v1 = vld [vmem:[%s35_s1] sm:$0x1] }
   0x3   :  { %v7_v2 = vmul.f32 %v4_v1, %v3_v0 }
   0x5   :  { %9 = vst [vmem:[%s36_s2] sm:$0x1] %v7_v2 }

// kernel: gcn_net_forward.1
= control target key start
LH: loop header
LB: loop body
LE: loop exit
PB: predicated region body
PF: predicated region fallthrough
CT: control target
= control target key end

     0   :  { %vm3081_vm0 = vmmov 0   ;;  %s4060_s3 = inlined_call_operand.vmem [shape: bf16[5,128,128], index: 3, kind: input, shape index: {}]   ;;  %s4061_s0 = inlined_call_operand.vmem [shape: bf16[128,128], index: 0, kind: input, shape index: {}]   ;;  %s4062_s4 = inlined_call_operand.vmem [shape: f32[5,1,128], index: 4, kind: input, shape index: {}]   ;;  %s4063_s1 = inlined_call_operand.vmem [shape: bf16[128,128], index: 1, kind: input, shape index: {}]   ;;  %s4064_s2 = inlined_call_operand.vmem [shape: f32[128,1], index: 2, kind: input, shape index: {}]   ;;  %s4065_s5 = inlined_call_operand.vmem [shape: f32[5,1,128], index: 5, kind: input, shape index: {}]   ;;  %s4066_s7 = inlined_call_operand.vmem [shape: bf16[3,128,128], index: 7, kind: input, shape index: {}]   ;;  %s4067_s6 = inlined_call_operand.vmem [shape: bf16[8,128], index: 6, kind: input, shape index: {}]   ;;  %s4068_s8 = inlined_call_operand.vmem [shape: f32[3,1,128], index: 8, kind: input, shape index: {}]   ;;  %s4069_s9 = inlined_call_operand.vmem [shape: f32[8,128], index: 9, kind: output, shape index: {}]  }
   0x1   :  { %v2992_v0 = vld [vmem:[%s4060_s3] sm:$0xff]   ;;  %v2993_v1 = vld [vmem:[%s4060_s3 + $0x8] sm:$0xff]   ;;  %v2994_v2 = vld [vmem:[%s4060_s3 + $0x10] sm:$0xff]  }
   0x2   :  { %2619 = vmatprep.subr.bf16.mxu0 %v2992_v0  ;;  %v2995_v3 = vld [vmem:[%s4060_s3 + $0x18] sm:$0xff]   ;;  %v3000_v4 = vld [vmem:[%s4061_s0] sm:$0xff]   ;;  %v2997_v6 = vld [vmem:[%s4060_s3 + $0x28] sm:$0xff]  }
   0x3   :  { %2620 = vmatpush3.bf16.msra.mxu0 %v2992_v0  ;;  %2635 = vmatprep.mubr.bf16.mxu0 %v3000_v4  ;;  %v2996_v5 = vld [vmem:[%s4060_s3 + $0x20] sm:$0xff]   ;;  %v3009_v8 = vld [vmem:[%s4060_s3 + $0x48] sm:$0xff]   ;;  %v2998_v9 = vld [vmem:[%s4060_s3 + $0x30] sm:$0xff]  }
   0x4   :  { %2621 = vmatprep.subr.bf16.mxu0 %v2993_v1  ;;  %v3008_v7 = vld [vmem:[%s4060_s3 + $0x40] sm:$0xff]   ;;  %v3010_v10 = vld [vmem:[%s4060_s3 + $0x50] sm:$0xff]   ;;  %v2999_v11 = vld [vmem:[%s4060_s3 + $0x38] sm:$0xff]  }
   0x5   :  { %2651 = vmatprep.subr.bf16.mxu1 %v3008_v7  ;;  %v3011_v12 = vld [vmem:[%s4060_s3 + $0x58] sm:$0xff]   ;;  %v3012_v13 = vld [vmem:[%s4060_s3 + $0x60] sm:$0xff]   ;;  %v3001_v14 = vld [vmem:[%s4061_s0 + $0x8] sm:$0xff]  }
   0x6   :  { %2652 = vmatpush3.bf16.msra.mxu1 %v3008_v7  ;;  %v3002_v15 = vld [vmem:[%s4061_s0 + $0x10] sm:$0xff]   ;;  %v3013_v16 = vld [vmem:[%s4060_s3 + $0x68] sm:$0xff]   ;;  %v3003_v17 = vld [vmem:[%s4061_s0 + $0x18] sm:$0xff]  }
   0x7   :  { %2622 = vmatpush3.bf16.msra.mxu0 %v2993_v1  ;;  %2653 = vmatprep.subr.bf16.mxu1 %v3009_v8  ;;  %v3004_v18 = vld [vmem:[%s4061_s0 + $0x20] sm:$0xff]   ;;  %v3005_v19 = vld [vmem:[%s4061_s0 + $0x28] sm:$0xff]   ;;  %v3006_v20 = vld [vmem:[%s4061_s0 + $0x30] sm:$0xff]  }
   0x8   :  { %2623 = vmatprep.subr.bf16.mxu0 %v2994_v2  ;;  %v3007_v21 = vld [vmem:[%s4061_s0 + $0x38] sm:$0xff]   ;;  %v3014_v22 = vld [vmem:[%s4060_s3 + $0x70] sm:$0xff]   ;;  %v2241_v25 = vld [vmem:[%s4062_s4] ss:$0 sm:$0xff] }
   0x9   :  { %v3015_v23 = vld [vmem:[%s4060_s3 + $0x78] sm:$0xff]   ;;  %v3258_v1 = vld [vmem:[%s4063_s1] sm:$0xff]   ;;  %v51_v4 = vld [vmem:[%s4064_s2 + $0x10] sm:$0xff] }
   0xa   :  { %2654 = vmatpush3.bf16.msra.mxu1 %v3009_v8  ;;  %v53_v7 = vld [vmem:[%s4064_s2 + $0x20] sm:$0xff]  ;;  %v54_v8 = vld [vmem:[%s4064_s2 + $0x28] sm:$0xff] }
   0xb   :  { %2624 = vmatpush3.bf16.msra.mxu0 %v2994_v2  ;;  %2655 = vmatprep.subr.bf16.mxu1 %v3010_v10  ;;  %v3079_v2 = vmov 0  }
   0xc   :  { %2625 = vmatprep.subr.bf16.mxu0 %v2995_v3  ;;  %2990 = vset.pattern.permute.xlu0 %v3079_v2 }
   0xd   :  { %2991 = vset.pattern.permute.xlu1 %v3079_v2  ;;  %v3336_v2 = vld [vmem:[%s4063_s1 + $0x18] sm:$0xff]  }
   0xe   :  { %2656 = vmatpush3.bf16.msra.mxu1 %v3010_v10  ;;  %642 = vperm.xlu1 %2991, %v51_v4   ;;  %v55_v10 = vld [vmem:[%s4064_s2 + $0x30] sm:$0xff]  ;;  %v3348_v4 = vld [vmem:[%s4063_s1 + $0x28] sm:$0xff]  }
   0xf   :  { %2626 = vmatpush3.bf16.msra.mxu0 %v2995_v3  ;;  %2657 = vmatprep.subr.bf16.mxu1 %v3011_v12  ;;  %v49_v3 = vld [vmem:[%s4064_s2] sm:$0xff] }
  0x10   :  { %2627 = vmatprep.subr.bf16.mxu0 %v2996_v5  ;;  %632 = vperm.xlu0 %2990, %v49_v3   ;;  %v3341_v3 = vld [vmem:[%s4063_s1 + $0x20] sm:$0xff]  }
  0x12   :  { %2658 = vmatpush3.bf16.msra.mxu1 %v3011_v12  ;;  %v57_v12 = vld [vmem:[%s4064_s2 + $0x40] sm:$0xff] }
  0x13   :  { %2628 = vmatpush3.bf16.msra.mxu0 %v2996_v5  ;;  %2659 = vmatprep.subr.bf16.mxu1 %v3012_v13  ;;  %v50_v5 = vld [vmem:[%s4064_s2 + $0x8] sm:$0xff] }
  0x14   :  { %2629 = vmatprep.subr.bf16.mxu0 %v2997_v6  ;;  %637 = vperm.xlu0 %2990, %v50_v5   ;;  %v3353_v5 = vld [vmem:[%s4063_s1 + $0x30] sm:$0xff]  }
  0x16   :  { %2660 = vmatpush3.bf16.msra.mxu1 %v3012_v13  ;;  %v58_v13 = vld [vmem:[%s4064_s2 + $0x48] sm:$0xff] }
  0x17   :  { %2630 = vmatpush3.bf16.msra.mxu0 %v2997_v6  ;;  %2661 = vmatprep.subr.bf16.mxu1 %v3013_v16  ;;  %v52_v6 = vld [vmem:[%s4064_s2 + $0x18] sm:$0xff] }
  0x18   :  { %2631 = vmatprep.subr.bf16.mxu0 %v2998_v9  ;;  %647 = vperm.xlu1 %2991, %v52_v6   ;;  %v3360_v6 = vld [vmem:[%s4063_s1 + $0x38] sm:$0xff]  }
  0x19   :  { %652 = vperm.xlu0 %2990, %v53_v7   ;;  %v3028_v7 = vld [vmem:[%s4060_s3 + $0xa0] sm:$0xff]  }
  0x1a   :  { %2662 = vmatpush3.bf16.msra.mxu1 %v3013_v16  ;;  %v60_v16 = vld [vmem:[%s4064_s2 + $0x58] sm:$0xff] }
  0x1b   :  { %2632 = vmatpush3.bf16.msra.mxu0 %v2998_v9  ;;  %2663 = vmatprep.subr.bf16.mxu1 %v3014_v22  ;;  %v3024_v9 = vld [vmem:[%s4060_s3 + $0x80] sm:$0xff]  }
  0x1c   :  { %2633 = vmatprep.subr.bf16.mxu0 %v2999_v11  ;;  %657 = vperm.xlu1 %2991, %v54_v8   ;;  %v3029_v8 = vld [vmem:[%s4060_s3 + $0xa8] sm:$0xff]  }
  0x1d   :  { %662 = vperm.xlu0 %2990, %v55_v10   ;;  %v3031_v10 = vld [vmem:[%s4060_s3 + $0xb8] sm:$0xff]  }
  0x1e   :  { %2664 = vmatpush3.bf16.msra.mxu1 %v3014_v22  ;;  %v64_v22 = vld [vmem:[%s4064_s2 + $0x78] sm:$0xff] }
  0x1f   :  { %2634 = vmatpush3.bf16.msra.mxu0 %v2999_v11  ;;  %2665 = vmatprep.subr.bf16.mxu1 %v3015_v23  ;;  %v56_v11 = vld [vmem:[%s4064_s2 + $0x38] sm:$0xff] }
  0x20   :  { %667 = vperm.xlu1 %2991, %v56_v11  }
  0x21   :  { %672 = vperm.xlu0 %2990, %v57_v12  }
  0x22   :  { %2636 = vmatmul.mubr.bf16.vlgmr.msra.gmra.mrb[0].mxu0 %v3001_v14  ;;  %2666 = vmatpush3.bf16.msra.mxu1 %v3015_v23  ;;  %v3025_v14 = vld [vmem:[%s4060_s3 + $0x88] sm:$0xff]  }
  0x23   :  { %2639 = vmatprep.mubr.bf16.mxu0 %v3002_v15  ;;  %2715 = vmatprep.subr.bf16.mxu1 %v3024_v9  ;;  %v59_v15 = vld [vmem:[%s4064_s2 + $0x50] sm:$0xff] }
  0x24   :  { %677 = vperm.xlu1 %2991, %v58_v13  }
  0x25   :  { %682 = vperm.xlu0 %2990, %v59_v15  }
  0x28   :  { %687 = vperm.xlu1 %2991, %v60_v16  }
  0x2a   :  { %2640 = vmatmul.mubr.bf16.gmra.mrb[4].mxu0 %v3003_v17  ;;  %v3026_v17 = vld [vmem:[%s4060_s3 + $0x90] sm:$0xff]  }
  0x2b   :  { %2643 = vmatprep.mubr.bf16.mxu0 %v3004_v18  ;;  %v61_v18 = vld [vmem:[%s4064_s2 + $0x60] sm:$0xff] }
  0x2c   :  { %692 = vperm.xlu0 %2990, %v61_v18  }
  0x32   :  { %2644 = vmatmul.mubr.bf16.gmra.mrb[8].mxu0 %v3005_v19  ;;  %v62_v19 = vld [vmem:[%s4064_s2 + $0x68] sm:$0xff] }
  0x33   :  { %2647 = vmatprep.mubr.bf16.mxu0 %v3006_v20  ;;  %v3027_v20 = vld [vmem:[%s4060_s3 + $0x98] sm:$0xff]   ;;  %697 = vperm.xlu1 %2991, %v62_v19  }
  0x37   :  { %707 = vperm.xlu1 %2991, %v64_v22   ;;  %v3399_v22 = vld [vmem:[%s4065_s5 + $0x1] ss:$0 sm:$0xff] }
  0x3a   :  { %2648 = vmatmul.mubr.bf16.gmra.mrb[12].mxu0 %v3007_v21  ;;  %v63_v21 = vld [vmem:[%s4064_s2 + $0x70] sm:$0xff] }
  0x3b   :  { %2699 = vmatprep.mubr.bf16.mxu0 %v3258_v1  ;;  %702 = vperm.xlu0 %2990, %v63_v21  }
  0x8d   :  { %v3378_v12 = vpop.permute.xlu1 %642 }
  0x8f   :  { %v3376_v11 = vpop.permute.xlu0 %632 }
  0x93   :  { %v3380_v13 = vpop.permute.xlu0 %637 }
  0x98   :  { %v3384_v15 = vpop.permute.xlu0 %652 }
  0x9c   :  { %v3394_v21 = vpop.permute.xlu0 %662 }
  0xf5   :  { %v2637_v24 = vpop.f32.mrb[0].mxu0 }
  0xf6   :  { %v234_v26 = vpop.f32.mrb[1].mxu0  ;;  %v3213_v32 = vadd.f32 %v2637_v24, %v2241_v25 }
  0xf7   :  { %v2638_v27 = vpop.f32.mrb[2].mxu0  ;;  %v3209_v30 = vadd.f32 %v2241_v25, %v234_v26 }
  0xf8   :  { %v3207_v28 = vadd.f32 %v2638_v27, %v2241_v25  ;;  %v237_v29 = vpop.f32.mrb[3].mxu0 }
  0xf9   :  { %v3211_v31 = vadd.f32 %v2241_v25, %v237_v29 }
  0xfa   :  { %v319_v34 = vpack.c.bf16 %v3207_v28, %v3213_v32 }
  0xfb   :  { %v318_v33 = vpack.c.bf16 %v3211_v31, %v3209_v30 }
  0xfd   :  { %v2641_v35 = vpop.f32.mrb[4].mxu0  ;;  %2667 = vmatprep.mubr.bf16.mxu1 %v318_v33 }
  0xfe   :  { %v250_v36 = vpop.f32.mrb[5].mxu0  ;;  %2668 = vmatmul.mubr.bf16.vlgmr.msra.gmra.mrb[0].mxu1 %v319_v34  ;;  %v3225_v42 = vadd.f32 %v2641_v35, %v2241_v25 }
  0xff   :  { %v2642_v37 = vpop.f32.mrb[6].mxu0  ;;  %v3221_v40 = vadd.f32 %v2241_v25, %v250_v36  ;;  %2716 = vmatpush3.bf16.msra.mxu1 %v3024_v9  ;;  %v3030_v9 = vld [vmem:[%s4060_s3 + $0xb0] sm:$0xff]  }
 0x100   :  { %v3219_v38 = vadd.f32 %v2642_v37, %v2241_v25  ;;  %v253_v39 = vpop.f32.mrb[7].mxu0  ;;  %2717 = vmatprep.subr.bf16.mxu1 %v3025_v14 }
 0x101   :  { %v3223_v41 = vadd.f32 %v2241_v25, %v253_v39 }
 0x102   :  { %v321_v44 = vpack.c.bf16 %v3219_v38, %v3225_v42 }
 0x103   :  { %v320_v43 = vpack.c.bf16 %v3223_v41, %v3221_v40  ;;  %2718 = vmatpush3.bf16.msra.mxu1 %v3025_v14  ;;  %v3382_v14 = vpop.permute.xlu1 %647 }
 0x104   :  { %2719 = vmatprep.subr.bf16.mxu1 %v3026_v17 }
 0x105   :  { %v2645_v45 = vpop.f32.mrb[8].mxu0  ;;  %2671 = vmatprep.mubr.bf16.mxu1 %v320_v43 }
 0x106   :  { %v266_v46 = vpop.f32.mrb[9].mxu0  ;;  %2672 = vmatmul.mubr.bf16.gmra.mrb[4].mxu1 %v321_v44  ;;  %v3237_v52 = vadd.f32 %v2645_v45, %v2241_v25 }
 0x107   :  { %v2646_v47 = vpop.f32.mrb[10].mxu0  ;;  %v3233_v50 = vadd.f32 %v2241_v25, %v266_v46  ;;  %2720 = vmatpush3.bf16.msra.mxu1 %v3026_v17  ;;  %v3386_v16 = vpop.permute.xlu1 %657  ;;  %v3391_v17 = vld [vmem:[%s4062_s4 + $0x1] ss:$0 sm:$0xff] }
 0x108   :  { %v3231_v48 = vadd.f32 %v2646_v47, %v2241_v25  ;;  %v269_v49 = vpop.f32.mrb[11].mxu0  ;;  %2721 = vmatprep.subr.bf16.mxu1 %v3027_v20 }
 0x109   :  { %v3235_v51 = vadd.f32 %v2241_v25, %v269_v49 }
 0x10a   :  { %v323_v54 = vpack.c.bf16 %v3231_v48, %v3237_v52 }
 0x10b   :  { %v322_v53 = vpack.c.bf16 %v3235_v51, %v3233_v50  ;;  %2722 = vmatpush3.bf16.msra.mxu1 %v3027_v20 }
 0x10c   :  { %2723 = vmatprep.subr.bf16.mxu1 %v3028_v7 }
 0x10d   :  { %v2649_v55 = vpop.f32.mrb[12].mxu0  ;;  %2675 = vmatprep.mubr.bf16.mxu1 %v322_v53 }
 0x10e   :  { %v282_v56 = vpop.f32.mrb[13].mxu0  ;;  %2676 = vmatmul.mubr.bf16.gmra.mrb[8].mxu1 %v323_v54  ;;  %v3249_v62 = vadd.f32 %v2649_v55, %v2241_v25 }
 0x10f   :  { %v2650_v57 = vpop.f32.mrb[14].mxu0  ;;  %v3245_v60 = vadd.f32 %v2241_v25, %v282_v56  ;;  %2724 = vmatpush3.bf16.msra.mxu1 %v3028_v7 }
 0x110   :  { %v3243_v58 = vadd.f32 %v2650_v57, %v2241_v25  ;;  %v285_v59 = vpop.f32.mrb[15].mxu0  ;;  %2725 = vmatprep.subr.bf16.mxu1 %v3029_v8 }
 0x111   :  { %v3247_v61 = vadd.f32 %v2241_v25, %v285_v59 }
 0x112   :  { %v325_v0 = vpack.c.bf16 %v3243_v58, %v3249_v62 }
 0x113   :  { %v324_v63 = vpack.c.bf16 %v3247_v61, %v3245_v60  ;;  %2726 = vmatpush3.bf16.msra.mxu1 %v3029_v8 }
 0x114   :  { %2727 = vmatprep.subr.bf16.mxu1 %v3030_v9 }
 0x115   :  { %2679 = vmatprep.mubr.bf16.mxu1 %v324_v63  ;;  %v3324_v63 = vld [vmem:[%s4063_s1 + $0x8] sm:$0xff]  }
 0x116   :  { %2680 = vmatmul.mubr.bf16.gmra.mrb[12].mxu1 %v325_v0  ;;  %v3329_v0 = vld [vmem:[%s4063_s1 + $0x10] sm:$0xff]  }
 0x117   :  { %2728 = vmatpush3.bf16.msra.mxu1 %v3030_v9 }
 0x118   :  { %2729 = vmatprep.subr.bf16.mxu1 %v3031_v10 }
 0x11b   :  { %2730 = vmatpush3.bf16.msra.mxu1 %v3031_v10 }
 0x1d1   :  { %v2669_v23 = vpop.f32.mrb[0].mxu1 }
 0x1d2   :  { %v408_v24 = vpop.f32.mrb[1].mxu1 }
 0x1d3   :  { %v2670_v25 = vpop.f32.mrb[2].mxu1 }
 0x1d4   :  { %v472_v26 = vpack.c.bf16 %v2670_v25, %v2669_v23  ;;  %v411_v27 = vpop.f32.mrb[3].mxu1 }
 0x1d5   :  { %v471_v29 = vpack.c.bf16 %v411_v27, %v408_v24 }
 0x1d7   :  { %2683 = vmatprep.subr.bf16.mxu0 %v471_v29 }
 0x1d8   :  { %2684 = vmatpush3.bf16.msra.mxu0 %v471_v29  ;;  %v3404_v29 = vpop.permute.xlu1 %667 }
 0x1d9   :  { %v2673_v33 = vpop.f32.mrb[4].mxu1  ;;  %2685 = vmatprep.subr.bf16.mxu0 %v472_v26 }
 0x1da   :  { %v424_v34 = vpop.f32.mrb[5].mxu1 }
 0x1db   :  { %v2674_v35 = vpop.f32.mrb[6].mxu1 }
 0x1dc   :  { %v474_v36 = vpack.c.bf16 %v2674_v35, %v2673_v33  ;;  %v427_v37 = vpop.f32.mrb[7].mxu1  ;;  %2686 = vmatpush3.bf16.msra.mxu0 %v472_v26 }
 0x1dd   :  { %v473_v39 = vpack.c.bf16 %v427_v37, %v424_v34 }
 0x1df   :  { %2687 = vmatprep.subr.bf16.mxu0 %v473_v39 }
 0x1e0   :  { %2688 = vmatpush3.bf16.msra.mxu0 %v473_v39 }
 0x1e1   :  { %v2677_v43 = vpop.f32.mrb[8].mxu1  ;;  %2689 = vmatprep.subr.bf16.mxu0 %v474_v36 }
 0x1e2   :  { %v440_v44 = vpop.f32.mrb[9].mxu1 }
 0x1e3   :  { %v2678_v45 = vpop.f32.mrb[10].mxu1 }
 0x1e4   :  { %v476_v46 = vpack.c.bf16 %v2678_v45, %v2677_v43  ;;  %v443_v47 = vpop.f32.mrb[11].mxu1  ;;  %2690 = vmatpush3.bf16.msra.mxu0 %v474_v36 }
 0x1e5   :  { %v475_v49 = vpack.c.bf16 %v443_v47, %v440_v44  ;;  %v3413_v44 = vpop.permute.xlu0 %672 }
 0x1e7   :  { %2691 = vmatprep.subr.bf16.mxu0 %v475_v49 }
 0x1e8   :  { %2692 = vmatpush3.bf16.msra.mxu0 %v475_v49 }
 0x1e9   :  { %v2681_v53 = vpop.f32.mrb[12].mxu1  ;;  %2693 = vmatprep.subr.bf16.mxu0 %v476_v46 }
 0x1ea   :  { %v456_v54 = vpop.f32.mrb[13].mxu1 }
 0x1eb   :  { %v2682_v55 = vpop.f32.mrb[14].mxu1 }
 0x1ec   :  { %v478_v56 = vpack.c.bf16 %v2682_v55, %v2681_v53  ;;  %v459_v57 = vpop.f32.mrb[15].mxu1  ;;  %2694 = vmatpush3.bf16.msra.mxu0 %v476_v46 }
 0x1ed   :  { %v477_v59 = vpack.c.bf16 %v459_v57, %v456_v54 }
 0x1ef   :  { %2695 = vmatprep.subr.bf16.mxu0 %v477_v59 }
 0x1f0   :  { %2696 = vmatpush3.bf16.msra.mxu0 %v477_v59 }
 0x1f1   :  { %2697 = vmatprep.subr.bf16.mxu0 %v478_v56 }
 0x1f4   :  { %2698 = vmatpush3.bf16.msra.mxu0 %v478_v56  ;;  %v3417_v56 = vpop.permute.xlu1 %677 }
 0x1f7   :  { %2700 = vmatmul.mubr.bf16.vlgmr.msra.gmra.mrb[16].mxu0 %v3324_v63 }
 0x1f8   :  { %2703 = vmatprep.mubr.bf16.mxu0 %v3329_v0 }
 0x1ff   :  { %2704 = vmatmul.mubr.bf16.gmra.mrb[20].mxu0 %v3336_v2 }
 0x200   :  { %2707 = vmatprep.mubr.bf16.mxu0 %v3341_v3 }
 0x207   :  { %2708 = vmatmul.mubr.bf16.gmra.mrb[24].mxu0 %v3348_v4 }
 0x208   :  { %2711 = vmatprep.mubr.bf16.mxu0 %v3353_v5 }
 0x20f   :  { %2712 = vmatmul.mubr.bf16.gmra.mrb[28].mxu0 %v3360_v6 }
 0x210   :  { %2763 = vmatprep.mubr.bf16.mxu0 %v3258_v1 }
 0x2ca   :  { %v2701_v18 = vpop.f32.mrb[16].mxu0 }
 0x2cb   :  { %v576_v19 = vadd.f32 %v2701_v18, %v3391_v17  ;;  %v567_v20 = vpop.f32.mrb[17].mxu0 }
 0x2cc   :  { %v568_v23 = vadd.f32 %v3391_v17, %v567_v20  ;;  %v2702_v24 = vpop.f32.mrb[18].mxu0 }
 0x2cd   :  { %v712_v25 = vmul.f32 %v3378_v12, %v576_v19  ;;  %v579_v26 = vadd.f32 %v2702_v24, %v3391_v17  ;;  %v570_v27 = vpop.f32.mrb[19].mxu0 }
 0x2ce   :  { %v710_v33 = vmul.f32 %v3376_v11, %v568_v23  ;;  %v571_v34 = vadd.f32 %v3391_v17, %v570_v27  ;;  %v3438_v27 = vpop.permute.xlu0 %682 }
 0x2cf   :  { %v734_v35 = vadd.f32 %v3399_v22, %v712_v25  ;;  %v713_v36 = vmul.f32 %v3382_v14, %v579_v26 }
 0x2d0   :  { %v732_v37 = vadd.f32 %v3399_v22, %v710_v33  ;;  %v711_v39 = vmul.f32 %v3380_v13, %v571_v34 }
 0x2d1   :  { %v735_v43 = vadd.f32 %v3399_v22, %v713_v36  ;;  %v750_v49 = vmax.f32 %v734_v35, 0.0 }
 0x2d2   :  { %v748_v45 = vmax.f32 %v732_v37, 0.0  ;;  %v733_v46 = vadd.f32 %v3399_v22, %v711_v39  ;;  %v2705_v47 = vpop.f32.mrb[20].mxu0 }
 0x2d3   :  { %v751_v53 = vmax.f32 %v735_v43, 0.0  ;;  %v592_v54 = vadd.f32 %v2705_v47, %v3391_v17  ;;  %v583_v55 = vpop.f32.mrb[21].mxu0  ;;  %v3434_v25 = vadd.f32 %v750_v49, %v3213_v32  ;;  %v3447_v32 = vpop.permute.xlu1 %687 }
 0x2d4   :  { %v749_v57 = vmax.f32 %v733_v46, 0.0  ;;  %v584_v59 = vadd.f32 %v3391_v17, %v583_v55  ;;  %v2706_v7 = vpop.f32.mrb[22].mxu0  ;;  %v3428_v23 = vadd.f32 %v748_v45, %v3209_v30 }
 0x2d5   :  { %v3421_v8 = vadd.f32 %v751_v53, %v3207_v28  ;;  %v716_v9 = vmul.f32 %v3394_v21, %v592_v54  ;;  %v595_v10 = vadd.f32 %v2706_v7, %v3391_v17  ;;  %v586_v18 = vpop.f32.mrb[23].mxu0 }
 0x2d6   :  { %v714_v19 = vmul.f32 %v3384_v15, %v584_v59  ;;  %v587_v20 = vadd.f32 %v3391_v17, %v586_v18  ;;  %v3431_v24 = vadd.f32 %v749_v57, %v3211_v31 }
 0x2d7   :  { %v738_v28 = vadd.f32 %v3399_v22, %v716_v9  ;;  %v717_v26 = vmul.f32 %v3404_v29, %v595_v10  ;;  %v802_v31 = vpack.c.bf16 %v3421_v8, %v3434_v25  ;;  %v3457_v9 = vpop.permute.xlu0 %692 }
 0x2d8   :  { %v736_v33 = vadd.f32 %v3399_v22, %v714_v19  ;;  %v715_v34 = vmul.f32 %v3386_v16, %v587_v20  ;;  %v801_v30 = vpack.c.bf16 %v3431_v24, %v3428_v23 }
 0x2d9   :  { %v739_v35 = vadd.f32 %v3399_v22, %v717_v26  ;;  %v754_v43 = vmax.f32 %v738_v28, 0.0 }
 0x2da   :  { %v752_v36 = vmax.f32 %v736_v33, 0.0  ;;  %v737_v37 = vadd.f32 %v3399_v22, %v715_v34  ;;  %v2709_v39 = vpop.f32.mrb[24].mxu0  ;;  %2731 = vmatprep.mubr.bf16.mxu1 %v801_v30 }
 0x2db   :  { %v755_v45 = vmax.f32 %v739_v35, 0.0  ;;  %v608_v46 = vadd.f32 %v2709_v39, %v3391_v17  ;;  %v599_v47 = vpop.f32.mrb[25].mxu0  ;;  %2732 = vmatmul.mubr.bf16.vlgmr.msra.gmra.mrb[16].mxu1 %v802_v31  ;;  %v3470_v33 = vadd.f32 %v754_v43, %v3225_v42 }
 0x2dc   :  { %v753_v49 = vmax.f32 %v737_v37, 0.0  ;;  %v600_v53 = vadd.f32 %v3391_v17, %v599_v47  ;;  %v2710_v54 = vpop.f32.mrb[26].mxu0  ;;  %v3462_v19 = vadd.f32 %v752_v36, %v3221_v40 }
 0x2dd   :  { %v720_v55 = vmul.f32 %v3438_v27, %v608_v46  ;;  %v611_v57 = vadd.f32 %v2710_v54, %v3391_v17  ;;  %v602_v59 = vpop.f32.mrb[27].mxu0  ;;  %v3455_v7 = vadd.f32 %v755_v45, %v3219_v38  ;;  %v3472_v38 = vpop.permute.xlu1 %697 }
 0x2de   :  { %v718_v10 = vmul.f32 %v3413_v44, %v600_v53  ;;  %v603_v18 = vadd.f32 %v3391_v17, %v602_v59  ;;  %v3465_v20 = vadd.f32 %v753_v49, %v3223_v41  ;;  %v3483_v46 = vpop.permute.xlu0 %702 }
 0x2df   :  { %v742_v28 = vadd.f32 %v3399_v22, %v720_v55  ;;  %v721_v26 = vmul.f32 %v3447_v32, %v611_v57  ;;  %v804_v41 = vpack.c.bf16 %v3455_v7, %v3470_v33 }
 0x2e0   :  { %v740_v34 = vadd.f32 %v3399_v22, %v718_v10  ;;  %v719_v30 = vmul.f32 %v3417_v56, %v603_v18  ;;  %v803_v40 = vpack.c.bf16 %v3465_v20, %v3462_v19 }
 0x2e1   :  { %v743_v31 = vadd.f32 %v3399_v22, %v721_v26  ;;  %v758_v42 = vmax.f32 %v742_v28, 0.0  ;;  %v3491_v10 = vpop.permute.xlu1 %707 }
 0x2e2   :  { %v756_v35 = vmax.f32 %v740_v34, 0.0  ;;  %v741_v36 = vadd.f32 %v3399_v22, %v719_v30  ;;  %v2713_v37 = vpop.f32.mrb[28].mxu0  ;;  %2735 = vmatprep.mubr.bf16.mxu1 %v803_v40 }
 0x2e3   :  { %v759_v39 = vmax.f32 %v743_v31, 0.0  ;;  %v624_v43 = vadd.f32 %v2713_v37, %v3391_v17  ;;  %v615_v45 = vpop.f32.mrb[29].mxu0  ;;  %2736 = vmatmul.mubr.bf16.gmra.mrb[20].mxu1 %v804_v41  ;;  %v3504_v31 = vadd.f32 %v758_v42, %v3237_v52 }
 0x2e4   :  { %v757_v47 = vmax.f32 %v741_v36, 0.0  ;;  %v616_v49 = vadd.f32 %v3391_v17, %v615_v45  ;;  %v2714_v53 = vpop.f32.mrb[30].mxu0  ;;  %v3496_v26 = vadd.f32 %v756_v35, %v3233_v50 }
 0x2e5   :  { %v724_v54 = vmul.f32 %v3483_v46, %v624_v43  ;;  %v627_v55 = vadd.f32 %v2714_v53, %v3391_v17  ;;  %v618_v57 = vpop.f32.mrb[31].mxu0  ;;  %v3489_v59 = vadd.f32 %v759_v39, %v3231_v48 }
 0x2e6   :  { %v722_v18 = vmul.f32 %v3457_v9, %v616_v49  ;;  %v619_v28 = vadd.f32 %v3391_v17, %v618_v57  ;;  %v3499_v34 = vadd.f32 %v757_v47, %v3235_v51 }
 0x2e7   :  { %v746_v30 = vadd.f32 %v3399_v22, %v724_v54  ;;  %v725_v40 = vmul.f32 %v3491_v10, %v627_v55  ;;  %v806_v51 = vpack.c.bf16 %v3489_v59, %v3504_v31 }
 0x2e8   :  { %v744_v48 = vadd.f32 %v3399_v22, %v722_v18  ;;  %v723_v41 = vmul.f32 %v3472_v38, %v619_v28  ;;  %v805_v17 = vpack.c.bf16 %v3499_v34, %v3496_v26 }
 0x2e9   :  { %v747_v50 = vadd.f32 %v3399_v22, %v725_v40  ;;  %v762_v37 = vmax.f32 %v746_v30, 0.0 }
 0x2ea   :  { %v760_v35 = vmax.f32 %v744_v48, 0.0  ;;  %v745_v36 = vadd.f32 %v3399_v22, %v723_v41  ;;  %2739 = vmatprep.mubr.bf16.mxu1 %v805_v17 }
 0x2eb   :  { %v763_v39 = vmax.f32 %v747_v50, 0.0  ;;  %2740 = vmatmul.mubr.bf16.gmra.mrb[24].mxu1 %v806_v51  ;;  %v3524_v47 = vadd.f32 %v762_v37, %v3249_v62  ;;  %v3035_v62 = vld [vmem:[%s4060_s3 + $0xd8] sm:$0xff]  }
 0x2ec   :  { %v761_v52 = vmax.f32 %v745_v36, 0.0  ;;  %v3518_v43 = vadd.f32 %v760_v35, %v3245_v60  ;;  %v3033_v60 = vld [vmem:[%s4060_s3 + $0xc8] sm:$0xff]  }
 0x2ed   :  { %v3515_v42 = vadd.f32 %v763_v39, %v3243_v58  ;;  %v3032_v58 = vld [vmem:[%s4060_s3 + $0xc0] sm:$0xff]  }
 0x2ee   :  { %v3521_v45 = vadd.f32 %v761_v52, %v3247_v61  ;;  %2779 = vmatprep.subr.bf16.mxu1 %v3032_v58  ;;  %v3034_v61 = vld [vmem:[%s4060_s3 + $0xd0] sm:$0xff]  }
 0x2ef   :  { %v808_v49 = vpack.c.bf16 %v3515_v42, %v3524_v47  ;;  %2780 = vmatpush3.bf16.msra.mxu1 %v3032_v58 }
 0x2f0   :  { %v807_v22 = vpack.c.bf16 %v3521_v45, %v3518_v43  ;;  %2781 = vmatprep.subr.bf16.mxu1 %v3033_v60 }
 0x2f2   :  { %2743 = vmatprep.mubr.bf16.mxu1 %v807_v22 }
 0x2f3   :  { %2744 = vmatmul.mubr.bf16.gmra.mrb[28].mxu1 %v808_v49 }
 0x2f4   :  { %2782 = vmatpush3.bf16.msra.mxu1 %v3033_v60 }
 0x2f5   :  { %2783 = vmatprep.subr.bf16.mxu1 %v3034_v61 }
 0x2f8   :  { %2784 = vmatpush3.bf16.msra.mxu1 %v3034_v61 }
 0x2f9   :  { %2785 = vmatprep.subr.bf16.mxu1 %v3035_v62 }
 0x2fc   :  { %2786 = vmatpush3.bf16.msra.mxu1 %v3035_v62 }
 0x3ae   :  { %v2733_v53 = vpop.f32.mrb[16].mxu1 }
 0x3af   :  { %v891_v54 = vpop.f32.mrb[17].mxu1 }
 0x3b0   :  { %v2734_v55 = vpop.f32.mrb[18].mxu1 }
 0x3b1   :  { %v955_v57 = vpack.c.bf16 %v2734_v55, %v2733_v53  ;;  %v894_v18 = vpop.f32.mrb[19].mxu1  ;;  %v3036_v53 = vld [vmem:[%s4060_s3 + $0xe0] sm:$0xff]   ;;  %v3038_v55 = vld [vmem:[%s4060_s3 + $0xf0] sm:$0xff]  }
 0x3b2   :  { %v954_v28 = vpack.c.bf16 %v894_v18, %v891_v54  ;;  %2787 = vmatprep.subr.bf16.mxu1 %v3036_v53  ;;  %v3037_v54 = vld [vmem:[%s4060_s3 + $0xe8] sm:$0xff]   ;;  %v3565_v18 = vld [vmem:[%s4062_s4 + $0x2] ss:$0 sm:$0xff] }
 0x3b3   :  { %2788 = vmatpush3.bf16.msra.mxu1 %v3036_v53 }
 0x3b4   :  { %2747 = vmatprep.subr.bf16.mxu0 %v954_v28  ;;  %2789 = vmatprep.subr.bf16.mxu1 %v3037_v54 }
 0x3b5   :  { %2748 = vmatpush3.bf16.msra.mxu0 %v954_v28 }
 0x3b6   :  { %v2737_v30 = vpop.f32.mrb[20].mxu1  ;;  %2749 = vmatprep.subr.bf16.mxu0 %v955_v57 }
 0x3b7   :  { %v907_v40 = vpop.f32.mrb[21].mxu1  ;;  %2790 = vmatpush3.bf16.msra.mxu1 %v3037_v54 }
 0x3b8   :  { %v2738_v48 = vpop.f32.mrb[22].mxu1  ;;  %2791 = vmatprep.subr.bf16.mxu1 %v3038_v55 }
 0x3b9   :  { %v957_v41 = vpack.c.bf16 %v2738_v48, %v2737_v30  ;;  %v910_v17 = vpop.f32.mrb[23].mxu1  ;;  %2750 = vmatpush3.bf16.msra.mxu0 %v955_v57  ;;  %v3039_v57 = vld [vmem:[%s4060_s3 + $0xf8] sm:$0xff]   ;;  %v3571_v48 = vld [vmem:[%s4065_s5 + $0x2] ss:$0 sm:$0xff] }
 0x3ba   :  { %v956_v50 = vpack.c.bf16 %v910_v17, %v907_v40 }
 0x3bb   :  { %2792 = vmatpush3.bf16.msra.mxu1 %v3038_v55 }
 0x3bc   :  { %2751 = vmatprep.subr.bf16.mxu0 %v956_v50  ;;  %2793 = vmatprep.subr.bf16.mxu1 %v3039_v57 }
 0x3bd   :  { %2752 = vmatpush3.bf16.msra.mxu0 %v956_v50 }
 0x3be   :  { %v2741_v51 = vpop.f32.mrb[24].mxu1  ;;  %2753 = vmatprep.subr.bf16.mxu0 %v957_v41 }
 0x3bf   :  { %v923_v35 = vpop.f32.mrb[25].mxu1  ;;  %2794 = vmatpush3.bf16.msra.mxu1 %v3039_v57 }
 0x3c0   :  { %v2742_v36 = vpop.f32.mrb[26].mxu1 }
 0x3c1   :  { %v959_v37 = vpack.c.bf16 %v2742_v36, %v2741_v51  ;;  %v926_v39 = vpop.f32.mrb[27].mxu1  ;;  %2754 = vmatpush3.bf16.msra.mxu0 %v957_v41 }
 0x3c2   :  { %v958_v52 = vpack.c.bf16 %v926_v39, %v923_v35 }
 0x3c4   :  { %2755 = vmatprep.subr.bf16.mxu0 %v958_v52 }
 0x3c5   :  { %2756 = vmatpush3.bf16.msra.mxu0 %v958_v52 }
 0x3c6   :  { %v2745_v22 = vpop.f32.mrb[28].mxu1  ;;  %2757 = vmatprep.subr.bf16.mxu0 %v959_v37 }
 0x3c7   :  { %v939_v49 = vpop.f32.mrb[29].mxu1 }
 0x3c8   :  { %v2746_v58 = vpop.f32.mrb[30].mxu1 }
 0x3c9   :  { %v961_v60 = vpack.c.bf16 %v2746_v58, %v2745_v22  ;;  %v942_v61 = vpop.f32.mrb[31].mxu1  ;;  %2758 = vmatpush3.bf16.msra.mxu0 %v959_v37 }
 0x3ca   :  { %v960_v62 = vpack.c.bf16 %v942_v61, %v939_v49 }
 0x3cc   :  { %2759 = vmatprep.subr.bf16.mxu0 %v960_v62 }
 0x3cd   :  { %2760 = vmatpush3.bf16.msra.mxu0 %v960_v62 }
 0x3ce   :  { %2761 = vmatprep.subr.bf16.mxu0 %v961_v60 }
 0x3d1   :  { %2762 = vmatpush3.bf16.msra.mxu0 %v961_v60 }
 0x3d4   :  { %2764 = vmatmul.mubr.bf16.vlgmr.msra.gmra.mrb[32].mxu0 %v3324_v63 }
 0x3d5   :  { %2767 = vmatprep.mubr.bf16.mxu0 %v3329_v0 }
 0x3dc   :  { %2768 = vmatmul.mubr.bf16.gmra.mrb[36].mxu0 %v3336_v2 }
 0x3dd   :  { %2771 = vmatprep.mubr.bf16.mxu0 %v3341_v3 }
 0x3e4   :  { %2772 = vmatmul.mubr.bf16.gmra.mrb[40].mxu0 %v3348_v4 }
 0x3e5   :  { %2775 = vmatprep.mubr.bf16.mxu0 %v3353_v5 }
 0x3ec   :  { %2776 = vmatmul.mubr.bf16.gmra.mrb[44].mxu0 %v3360_v6 }
 0x3ed   :  { %2827 = vmatprep.mubr.bf16.mxu0 %v3258_v1 }
 0x4a7   :  { %v2765_v28 = vpop.f32.mrb[32].mxu0 }
 0x4a8   :  { %v1011_v30 = vadd.f32 %v2765_v28, %v3565_v18  ;;  %v1002_v40 = vpop.f32.mrb[33].mxu0 }
 0x4a9   :  { %v1003_v41 = vadd.f32 %v3565_v18, %v1002_v40  ;;  %v2766_v17 = vpop.f32.mrb[34].mxu0 }
 0x4aa   :  { %v1067_v50 = vmul.f32 %v1011_v30, %v3378_v12  ;;  %v1014_v51 = vadd.f32 %v2766_v17, %v3565_v18  ;;  %v1005_v35 = vpop.f32.mrb[35].mxu0 }
 0x4ab   :  { %v1065_v36 = vmul.f32 %v1003_v41, %v3376_v11  ;;  %v1006_v37 = vadd.f32 %v3565_v18, %v1005_v35 }
 0x4ac   :  { %v1089_v39 = vadd.f32 %v3571_v48, %v1067_v50  ;;  %v1068_v52 = vmul.f32 %v1014_v51, %v3382_v14 }
 0x4ad   :  { %v1087_v22 = vadd.f32 %v3571_v48, %v1065_v36  ;;  %v1066_v49 = vmul.f32 %v1006_v37, %v3380_v13 }
 0x4ae   :  { %v1090_v58 = vadd.f32 %v3571_v48, %v1068_v52  ;;  %v1105_v53 = vmax.f32 %v1089_v39, 0.0 }
 0x4af   :  { %v1103_v60 = vmax.f32 %v1087_v22, 0.0  ;;  %v1088_v61 = vadd.f32 %v3571_v48, %v1066_v49  ;;  %v2769_v62 = vpop.f32.mrb[36].mxu0 }
 0x4b0   :  { %v1106_v54 = vmax.f32 %v1090_v58, 0.0  ;;  %v1027_v55 = vadd.f32 %v2769_v62, %v3565_v18  ;;  %v1018_v57 = vpop.f32.mrb[37].mxu0  ;;  %v3600_v52 = vadd.f32 %v1105_v53, %v3434_v25 }
 0x4b1   :  { %v1104_v28 = vmax.f32 %v1088_v61, 0.0  ;;  %v1019_v30 = vadd.f32 %v3565_v18, %v1018_v57  ;;  %v2770_v40 = vpop.f32.mrb[38].mxu0  ;;  %v3594_v37 = vadd.f32 %v1103_v60, %v3428_v23 }
 0x4b2   :  { %v3587_v41 = vadd.f32 %v1106_v54, %v3421_v8  ;;  %v1071_v17 = vmul.f32 %v1027_v55, %v3394_v21  ;;  %v1030_v50 = vadd.f32 %v2770_v40, %v3565_v18  ;;  %v1021_v51 = vpop.f32.mrb[39].mxu0 }
 0x4b3   :  { %v1069_v35 = vmul.f32 %v1019_v30, %v3384_v15  ;;  %v1022_v36 = vadd.f32 %v3565_v18, %v1021_v51  ;;  %v3597_v39 = vadd.f32 %v1104_v28, %v3431_v24 }
 0x4b4   :  { %v1093_v8 = vadd.f32 %v3571_v48, %v1071_v17  ;;  %v1072_v22 = vmul.f32 %v1030_v50, %v3404_v29  ;;  %v1157_v23 = vpack.c.bf16 %v3587_v41, %v3600_v52 }
 0x4b5   :  { %v1091_v49 = vadd.f32 %v3571_v48, %v1069_v35  ;;  %v1070_v58 = vmul.f32 %v1022_v36, %v3386_v16  ;;  %v1156_v61 = vpack.c.bf16 %v3597_v39, %v3594_v37 }
 0x4b6   :  { %v1094_v24 = vadd.f32 %v3571_v48, %v1072_v22  ;;  %v1109_v53 = vmax.f32 %v1093_v8, 0.0 }
 0x4b7   :  { %v1107_v60 = vmax.f32 %v1091_v49, 0.0  ;;  %v1092_v25 = vadd.f32 %v3571_v48, %v1070_v58  ;;  %v2773_v62 = vpop.f32.mrb[40].mxu0  ;;  %2795 = vmatprep.mubr.bf16.mxu1 %v1156_v61 }
 0x4b8   :  { %v1110_v54 = vmax.f32 %v1094_v24, 0.0  ;;  %v1043_v55 = vadd.f32 %v2773_v62, %v3565_v18  ;;  %v1034_v57 = vpop.f32.mrb[41].mxu0  ;;  %2796 = vmatmul.mubr.bf16.vlgmr.msra.gmra.mrb[32].mxu1 %v1157_v23  ;;  %v3630_v23 = vadd.f32 %v1109_v53, %v3470_v33 }
 0x4b9   :  { %v1108_v28 = vmax.f32 %v1092_v25, 0.0  ;;  %v1035_v30 = vadd.f32 %v3565_v18, %v1034_v57  ;;  %v2774_v40 = vpop.f32.mrb[42].mxu0  ;;  %v3622_v22 = vadd.f32 %v1107_v60, %v3462_v19 }
 0x4ba   :  { %v1075_v17 = vmul.f32 %v1043_v55, %v3438_v27  ;;  %v1046_v50 = vadd.f32 %v2774_v40, %v3565_v18  ;;  %v1037_v51 = vpop.f32.mrb[43].mxu0  ;;  %v3617_v35 = vadd.f32 %v1110_v54, %v3455_v7 }
 0x4bb   :  { %v1073_v36 = vmul.f32 %v1035_v30, %v3413_v44  ;;  %v1038_v8 = vadd.f32 %v3565_v18, %v1037_v51  ;;  %v3625_v49 = vadd.f32 %v1108_v28, %v3465_v20 }
 0x4bc   :  { %v1097_v58 = vadd.f32 %v3571_v48, %v1075_v17  ;;  %v1076_v61 = vmul.f32 %v1046_v50, %v3447_v32  ;;  %v1159_v20 = vpack.c.bf16 %v3617_v35, %v3630_v23 }
 0x4bd   :  { %v1095_v7 = vadd.f32 %v3571_v48, %v1073_v36  ;;  %v1074_v24 = vmul.f32 %v1038_v8, %v3417_v56  ;;  %v1158_v25 = vpack.c.bf16 %v3625_v49, %v3622_v22 }
 0x4be   :  { %v1098_v19 = vadd.f32 %v3571_v48, %v1076_v61  ;;  %v1113_v55 = vmax.f32 %v1097_v58, 0.0 }
 0x4bf   :  { %v1111_v60 = vmax.f32 %v1095_v7, 0.0  ;;  %v1096_v62 = vadd.f32 %v3571_v48, %v1074_v24  ;;  %v2777_v54 = vpop.f32.mrb[44].mxu0  ;;  %2799 = vmatprep.mubr.bf16.mxu1 %v1158_v25 }
 0x4c0   :  { %v1114_v33 = vmax.f32 %v1098_v19, 0.0  ;;  %v1059_v53 = vadd.f32 %v2777_v54, %v3565_v18  ;;  %v1050_v57 = vpop.f32.mrb[45].mxu0  ;;  %2800 = vmatmul.mubr.bf16.gmra.mrb[36].mxu1 %v1159_v20  ;;  %v3658_v19 = vadd.f32 %v1113_v55, %v3504_v31 }
 0x4c1   :  { %v1112_v28 = vmax.f32 %v1096_v62, 0.0  ;;  %v1051_v30 = vadd.f32 %v3565_v18, %v1050_v57  ;;  %v2778_v40 = vpop.f32.mrb[46].mxu0  ;;  %v3650_v61 = vadd.f32 %v1111_v60, %v3496_v26 }
 0x4c2   :  { %v1079_v17 = vmul.f32 %v1059_v53, %v3483_v46  ;;  %v1062_v50 = vadd.f32 %v2778_v40, %v3565_v18  ;;  %v1053_v51 = vpop.f32.mrb[47].mxu0  ;;  %v3645_v36 = vadd.f32 %v1114_v33, %v3489_v59 }
 0x4c3   :  { %v1077_v8 = vmul.f32 %v1051_v30, %v3457_v9  ;;  %v1054_v58 = vadd.f32 %v3565_v18, %v1053_v51  ;;  %v3653_v7 = vadd.f32 %v1112_v28, %v3499_v34 }
 0x4c4   :  { %v1101_v24 = vadd.f32 %v3571_v48, %v1079_v17  ;;  %v1080_v25 = vmul.f32 %v1062_v50, %v3491_v10  ;;  %v1161_v34 = vpack.c.bf16 %v3645_v36, %v3658_v19 }
 0x4c5   :  { %v1099_v59 = vadd.f32 %v3571_v48, %v1077_v8  ;;  %v1078_v20 = vmul.f32 %v1054_v58, %v3472_v38  ;;  %v1160_v18 = vpack.c.bf16 %v3653_v7, %v3650_v61 }
 0x4c6   :  { %v1102_v26 = vadd.f32 %v3571_v48, %v1080_v25  ;;  %v1117_v54 = vmax.f32 %v1101_v24, 0.0 }
 0x4c7   :  { %v1115_v60 = vmax.f32 %v1099_v59, 0.0  ;;  %v1100_v62 = vadd.f32 %v3571_v48, %v1078_v20  ;;  %2803 = vmatprep.mubr.bf16.mxu1 %v1160_v18 }
 0x4c8   :  { %v1118_v33 = vmax.f32 %v1102_v26, 0.0  ;;  %2804 = vmatmul.mubr.bf16.gmra.mrb[40].mxu1 %v1161_v34  ;;  %v3678_v28 = vadd.f32 %v1117_v54, %v3524_v47  ;;  %v3043_v47 = vld [vmem:[%s4060_s3 + $0x118] sm:$0xff]  }
 0x4c9   :  { %v1116_v31 = vmax.f32 %v1100_v62, 0.0  ;;  %v3672_v53 = vadd.f32 %v1115_v60, %v3518_v43  ;;  %v3041_v43 = vld [vmem:[%s4060_s3 + $0x108] sm:$0xff]  }
 0x4ca   :  { %v3669_v55 = vadd.f32 %v1118_v33, %v3515_v42  ;;  %v3040_v42 = vld [vmem:[%s4060_s3 + $0x100] sm:$0xff]  }
 0x4cb   :  { %v3675_v57 = vadd.f32 %v1116_v31, %v3521_v45  ;;  %2843 = vmatprep.subr.bf16.mxu1 %v3040_v42  ;;  %v3042_v45 = vld [vmem:[%s4060_s3 + $0x110] sm:$0xff]  }
 0x4cc   :  { %v1163_v30 = vpack.c.bf16 %v3669_v55, %v3678_v28  ;;  %2844 = vmatpush3.bf16.msra.mxu1 %v3040_v42 }
 0x4cd   :  { %v1162_v48 = vpack.c.bf16 %v3675_v57, %v3672_v53  ;;  %2845 = vmatprep.subr.bf16.mxu1 %v3041_v43 }
 0x4cf   :  { %2807 = vmatprep.mubr.bf16.mxu1 %v1162_v48 }
 0x4d0   :  { %2808 = vmatmul.mubr.bf16.gmra.mrb[44].mxu1 %v1163_v30 }
 0x4d1   :  { %2846 = vmatpush3.bf16.msra.mxu1 %v3041_v43 }
 0x4d2   :  { %2847 = vmatprep.subr.bf16.mxu1 %v3042_v45 }
 0x4d5   :  { %2848 = vmatpush3.bf16.msra.mxu1 %v3042_v45 }
 0x4d6   :  { %2849 = vmatprep.subr.bf16.mxu1 %v3043_v47 }
 0x4d9   :  { %2850 = vmatpush3.bf16.msra.mxu1 %v3043_v47 }
 0x58b   :  { %v2797_v40 = vpop.f32.mrb[32].mxu1 }
 0x58c   :  { %v1246_v17 = vpop.f32.mrb[33].mxu1 }
 0x58d   :  { %v2798_v50 = vpop.f32.mrb[34].mxu1 }
 0x58e   :  { %v1310_v51 = vpack.c.bf16 %v2798_v50, %v2797_v40  ;;  %v1249_v8 = vpop.f32.mrb[35].mxu1  ;;  %v3044_v40 = vld [vmem:[%s4060_s3 + $0x120] sm:$0xff]  }
 0x58f   :  { %v1309_v58 = vpack.c.bf16 %v1249_v8, %v1246_v17  ;;  %2851 = vmatprep.subr.bf16.mxu1 %v3044_v40 }
 0x590   :  { %2852 = vmatpush3.bf16.msra.mxu1 %v3044_v40 }
 0x591   :  { %2811 = vmatprep.subr.bf16.mxu0 %v1309_v58 }
 0x592   :  { %2812 = vmatpush3.bf16.msra.mxu0 %v1309_v58 }
 0x593   :  { %v2801_v24 = vpop.f32.mrb[36].mxu1  ;;  %2813 = vmatprep.subr.bf16.mxu0 %v1310_v51 }
 0x594   :  { %v1262_v25 = vpop.f32.mrb[37].mxu1 }
 0x595   :  { %v2802_v59 = vpop.f32.mrb[38].mxu1 }
 0x596   :  { %v1312_v20 = vpack.c.bf16 %v2802_v59, %v2801_v24  ;;  %v1265_v18 = vpop.f32.mrb[39].mxu1  ;;  %2814 = vmatpush3.bf16.msra.mxu0 %v1310_v51 }
 0x597   :  { %v1311_v26 = vpack.c.bf16 %v1265_v18, %v1262_v25 }
 0x599   :  { %2815 = vmatprep.subr.bf16.mxu0 %v1311_v26 }
 0x59a   :  { %2816 = vmatpush3.bf16.msra.mxu0 %v1311_v26 }
 0x59b   :  { %v2805_v34 = vpop.f32.mrb[40].mxu1  ;;  %2817 = vmatprep.subr.bf16.mxu0 %v1312_v20 }
 0x59c   :  { %v1278_v60 = vpop.f32.mrb[41].mxu1 }
 0x59d   :  { %v2806_v62 = vpop.f32.mrb[42].mxu1 }
 0x59e   :  { %v1314_v54 = vpack.c.bf16 %v2806_v62, %v2805_v34  ;;  %v1281_v33 = vpop.f32.mrb[43].mxu1  ;;  %2818 = vmatpush3.bf16.msra.mxu0 %v1312_v20 }
 0x59f   :  { %v1313_v31 = vpack.c.bf16 %v1281_v33, %v1278_v60 }
 0x5a1   :  { %2819 = vmatprep.subr.bf16.mxu0 %v1313_v31 }
 0x5a2   :  { %2820 = vmatpush3.bf16.msra.mxu0 %v1313_v31 }
 0x5a3   :  { %v2809_v48 = vpop.f32.mrb[44].mxu1  ;;  %2821 = vmatprep.subr.bf16.mxu0 %v1314_v54 }
 0x5a4   :  { %v1294_v30 = vpop.f32.mrb[45].mxu1 }
 0x5a5   :  { %v2810_v42 = vpop.f32.mrb[46].mxu1 }
 0x5a6   :  { %v1316_v43 = vpack.c.bf16 %v2810_v42, %v2809_v48  ;;  %v1297_v45 = vpop.f32.mrb[47].mxu1  ;;  %2822 = vmatpush3.bf16.msra.mxu0 %v1314_v54 }
 0x5a7   :  { %v1315_v47 = vpack.c.bf16 %v1297_v45, %v1294_v30 }
 0x5a9   :  { %2823 = vmatprep.subr.bf16.mxu0 %v1315_v47 }
 0x5aa   :  { %2824 = vmatpush3.bf16.msra.mxu0 %v1315_v47 }
 0x5ab   :  { %2825 = vmatprep.subr.bf16.mxu0 %v1316_v43 }
 0x5ae   :  { %2826 = vmatpush3.bf16.msra.mxu0 %v1316_v43 }
 0x5b1   :  { %2828 = vmatmul.mubr.bf16.vlgmr.msra.gmra.mrb[48].mxu0 %v3324_v63  ;;  %v3045_v63 = vld [vmem:[%s4060_s3 + $0x128] sm:$0xff]  }
 0x5b2   :  { %2831 = vmatprep.mubr.bf16.mxu0 %v3329_v0  ;;  %2853 = vmatprep.subr.bf16.mxu1 %v3045_v63  ;;  %v3046_v0 = vld [vmem:[%s4060_s3 + $0x130] sm:$0xff]  }
 0x5b3   :  { %2854 = vmatpush3.bf16.msra.mxu1 %v3045_v63 }
 0x5b4   :  { %2855 = vmatprep.subr.bf16.mxu1 %v3046_v0 }
 0x5b7   :  { %2856 = vmatpush3.bf16.msra.mxu1 %v3046_v0 }
 0x5b9   :  { %2832 = vmatmul.mubr.bf16.gmra.mrb[52].mxu0 %v3336_v2  ;;  %v3719_v2 = vld [vmem:[%s4062_s4 + $0x3] ss:$0 sm:$0xff] }
 0x5ba   :  { %2835 = vmatprep.mubr.bf16.mxu0 %v3341_v3 }
 0x5c1   :  { %2836 = vmatmul.mubr.bf16.gmra.mrb[56].mxu0 %v3348_v4 }
 0x5c2   :  { %2839 = vmatprep.mubr.bf16.mxu0 %v3353_v5 }
 0x5c9   :  { %2840 = vmatmul.mubr.bf16.gmra.mrb[60].mxu0 %v3360_v6  ;;  %v3725_v6 = vld [vmem:[%s4065_s5 + $0x3] ss:$0 sm:$0xff] }
 0x5ca   :  { %2891 = vmatprep.mubr.bf16.mxu0 %v3258_v1  ;;  %v3047_v1 = vld [vmem:[%s4060_s3 + $0x138] sm:$0xff]  }
 0x5cb   :  { %2857 = vmatprep.subr.bf16.mxu1 %v3047_v1 }
 0x5cc   :  { %2858 = vmatpush3.bf16.msra.mxu1 %v3047_v1 }
 0x684   :  { %v2829_v3 = vpop.f32.mrb[48].mxu0 }
 0x685   :  { %v1366_v4 = vadd.f32 %v2829_v3, %v3719_v2  ;;  %v1357_v5 = vpop.f32.mrb[49].mxu0 }
 0x686   :  { %v1358_v17 = vadd.f32 %v3719_v2, %v1357_v5  ;;  %v2830_v50 = vpop.f32.mrb[50].mxu0 }
 0x687   :  { %v1422_v51 = vmul.f32 %v1366_v4, %v3378_v12  ;;  %v1369_v8 = vadd.f32 %v2830_v50, %v3719_v2  ;;  %v1360_v58 = vpop.f32.mrb[51].mxu0 }
 0x688   :  { %v1420_v24 = vmul.f32 %v1358_v17, %v3376_v11  ;;  %v1361_v25 = vadd.f32 %v3719_v2, %v1360_v58 }
 0x689   :  { %v1444_v59 = vadd.f32 %v3725_v6, %v1422_v51  ;;  %v1423_v20 = vmul.f32 %v1369_v8, %v3382_v14 }
 0x68a   :  { %v1442_v18 = vadd.f32 %v3725_v6, %v1420_v24  ;;  %v1421_v26 = vmul.f32 %v1361_v25, %v3380_v13 }
 0x68b   :  { %v1445_v34 = vadd.f32 %v3725_v6, %v1423_v20  ;;  %v1460_v33 = vmax.f32 %v1444_v59, 0.0 }
 0x68c   :  { %v1458_v60 = vmax.f32 %v1442_v18, 0.0  ;;  %v1443_v62 = vadd.f32 %v3725_v6, %v1421_v26  ;;  %v2833_v54 = vpop.f32.mrb[52].mxu0 }
 0x68d   :  { %v1461_v31 = vmax.f32 %v1445_v34, 0.0  ;;  %v1382_v48 = vadd.f32 %v2833_v54, %v3719_v2  ;;  %v1373_v30 = vpop.f32.mrb[53].mxu0  ;;  %v3754_v17 = vadd.f32 %v1460_v33, %v3600_v52 }
 0x68e   :  { %v1459_v42 = vmax.f32 %v1443_v62, 0.0  ;;  %v1374_v43 = vadd.f32 %v3719_v2, %v1373_v30  ;;  %v2834_v45 = vpop.f32.mrb[54].mxu0  ;;  %v3748_v4 = vadd.f32 %v1458_v60, %v3594_v37 }
 0x68f   :  { %v3741_v47 = vadd.f32 %v1461_v31, %v3587_v41  ;;  %v1426_v40 = vmul.f32 %v1382_v48, %v3394_v21  ;;  %v1385_v63 = vadd.f32 %v2834_v45, %v3719_v2  ;;  %v1376_v0 = vpop.f32.mrb[55].mxu0 }
 0x690   :  { %v1424_v1 = vmul.f32 %v1374_v43, %v3384_v15  ;;  %v1377_v3 = vadd.f32 %v3719_v2, %v1376_v0  ;;  %v3751_v5 = vadd.f32 %v1459_v42, %v3597_v39 }
 0x691   :  { %v1448_v41 = vadd.f32 %v3725_v6, %v1426_v40  ;;  %v1427_v50 = vmul.f32 %v1385_v63, %v3404_v29  ;;  %v1512_v37 = vpack.c.bf16 %v3741_v47, %v3754_v17 }
 0x692   :  { %v1446_v51 = vadd.f32 %v3725_v6, %v1424_v1  ;;  %v1425_v8 = vmul.f32 %v1377_v3, %v3386_v16  ;;  %v1511_v58 = vpack.c.bf16 %v3751_v5, %v3748_v4 }
 0x693   :  { %v1449_v39 = vadd.f32 %v3725_v6, %v1427_v50  ;;  %v1464_v59 = vmax.f32 %v1448_v41, 0.0 }
 0x694   :  { %v1462_v24 = vmax.f32 %v1446_v51, 0.0  ;;  %v1447_v52 = vadd.f32 %v3725_v6, %v1425_v8  ;;  %v2837_v25 = vpop.f32.mrb[56].mxu0  ;;  %2859 = vmatprep.mubr.bf16.mxu1 %v1511_v58 }
 0x695   :  { %v1465_v20 = vmax.f32 %v1449_v39, 0.0  ;;  %v1398_v18 = vadd.f32 %v2837_v25, %v3719_v2  ;;  %v1389_v26 = vpop.f32.mrb[57].mxu0  ;;  %2860 = vmatmul.mubr.bf16.vlgmr.msra.gmra.mrb[48].mxu1 %v1512_v37  ;;  %v3784_v0 = vadd.f32 %v1464_v59, %v3630_v23 }
 0x696   :  { %v1463_v34 = vmax.f32 %v1447_v52, 0.0  ;;  %v1390_v60 = vadd.f32 %v3719_v2, %v1389_v26  ;;  %v2838_v62 = vpop.f32.mrb[58].mxu0  ;;  %v3776_v43 = vadd.f32 %v1462_v24, %v3622_v22 }
 0x697   :  { %v1430_v54 = vmul.f32 %v1398_v18, %v3438_v27  ;;  %v1401_v33 = vadd.f32 %v2838_v62, %v3719_v2  ;;  %v1392_v31 = vpop.f32.mrb[59].mxu0  ;;  %v3771_v48 = vadd.f32 %v1465_v20, %v3617_v35 }
 0x698   :  { %v1428_v30 = vmul.f32 %v1390_v60, %v3413_v44  ;;  %v1393_v42 = vadd.f32 %v3719_v2, %v1392_v31  ;;  %v3779_v45 = vadd.f32 %v1463_v34, %v3625_v49 }
 0x699   :  { %v1452_v40 = vadd.f32 %v3725_v6, %v1430_v54  ;;  %v1431_v63 = vmul.f32 %v1401_v33, %v3447_v32  ;;  %v1514_v49 = vpack.c.bf16 %v3771_v48, %v3784_v0 }
 0x69a   :  { %v1450_v35 = vadd.f32 %v3725_v6, %v1428_v30  ;;  %v1429_v1 = vmul.f32 %v1393_v42, %v3417_v56  ;;  %v1513_v3 = vpack.c.bf16 %v3779_v45, %v3776_v43 }
 0x69b   :  { %v1453_v22 = vadd.f32 %v3725_v6, %v1431_v63  ;;  %v1468_v8 = vmax.f32 %v1452_v40, 0.0 }
 0x69c   :  { %v1466_v41 = vmax.f32 %v1450_v35, 0.0  ;;  %v1451_v50 = vadd.f32 %v3725_v6, %v1429_v1  ;;  %v2841_v51 = vpop.f32.mrb[60].mxu0  ;;  %2863 = vmatprep.mubr.bf16.mxu1 %v1513_v3 }
 0x69d   :  { %v1469_v23 = vmax.f32 %v1453_v22, 0.0  ;;  %v1414_v58 = vadd.f32 %v2841_v51, %v3719_v2  ;;  %v1405_v37 = vpop.f32.mrb[61].mxu0  ;;  %2864 = vmatmul.mubr.bf16.gmra.mrb[52].mxu1 %v1514_v49  ;;  %v3812_v31 = vadd.f32 %v1468_v8, %v3658_v19 }
 0x69e   :  { %v1467_v39 = vmax.f32 %v1451_v50, 0.0  ;;  %v1406_v24 = vadd.f32 %v3719_v2, %v1405_v37  ;;  %v2842_v52 = vpop.f32.mrb[62].mxu0  ;;  %v3804_v60 = vadd.f32 %v1466_v41, %v3650_v61 }
 0x69f   :  { %v1434_v25 = vmul.f32 %v1414_v58, %v3483_v46  ;;  %v1417_v59 = vadd.f32 %v2842_v52, %v3719_v2  ;;  %v1408_v20 = vpop.f32.mrb[63].mxu0  ;;  %v3799_v18 = vadd.f32 %v1469_v23, %v3645_v36 }
 0x6a0   :  { %v1432_v26 = vmul.f32 %v1406_v24, %v3457_v9  ;;  %v1409_v34 = vadd.f32 %v3719_v2, %v1408_v20  ;;  %v3807_v62 = vadd.f32 %v1467_v39, %v3653_v7 }
 0x6a1   :  { %v1456_v54 = vadd.f32 %v3725_v6, %v1434_v25  ;;  %v1435_v33 = vmul.f32 %v1417_v59, %v3491_v10  ;;  %v1516_v7 = vpack.c.bf16 %v3799_v18, %v3812_v31 }
 0x6a2   :  { %v1454_v36 = vadd.f32 %v3725_v6, %v1432_v26  ;;  %v1433_v30 = vmul.f32 %v1409_v34, %v3472_v38  ;;  %v1515_v2 = vpack.c.bf16 %v3807_v62, %v3804_v60 }
 0x6a3   :  { %v1457_v61 = vadd.f32 %v3725_v6, %v1435_v33  ;;  %v1472_v63 = vmax.f32 %v1456_v54, 0.0 }
 0x6a4   :  { %v1470_v42 = vmax.f32 %v1454_v36, 0.0  ;;  %v1455_v40 = vadd.f32 %v3725_v6, %v1433_v30  ;;  %2867 = vmatprep.mubr.bf16.mxu1 %v1515_v2 }
 0x6a5   :  { %v1473_v35 = vmax.f32 %v1457_v61, 0.0  ;;  %2868 = vmatmul.mubr.bf16.gmra.mrb[56].mxu1 %v1516_v7  ;;  %v3832_v49 = vadd.f32 %v1472_v63, %v3678_v28  ;;  %v3072_v7 = vld [vmem:[%s4063_s1 + $0x8] sm:$0xff]   ;;  %v3075_v63 = vld [vmem:[%s4063_s1 + $0x20] sm:$0xff]  }
 0x6a6   :  { %v1471_v19 = vmax.f32 %v1455_v40, 0.0  ;;  %v3826_v3 = vadd.f32 %v1470_v42, %v3672_v53  ;;  %v3073_v42 = vld [vmem:[%s4063_s1 + $0x10] sm:$0xff]   ;;  %v3074_v40 = vld [vmem:[%s4063_s1 + $0x18] sm:$0xff]  }
 0x6a7   :  { %v3823_v1 = vadd.f32 %v1473_v35, %v3669_v55  ;;  %v3076_v35 = vld [vmem:[%s4063_s1 + $0x28] sm:$0xff]  }
 0x6a8   :  { %v3829_v22 = vadd.f32 %v1471_v19, %v3675_v57  ;;  %v3077_v19 = vld [vmem:[%s4063_s1 + $0x30] sm:$0xff]  }
 0x6a9   :  { %v1518_v41 = vpack.c.bf16 %v3823_v1, %v3832_v49 }
 0x6aa   :  { %v1517_v6 = vpack.c.bf16 %v3829_v22, %v3826_v3 }
 0x6ac   :  { %2871 = vmatprep.mubr.bf16.mxu1 %v1517_v6  ;;  %v3078_v6 = vld [vmem:[%s4063_s1 + $0x38] sm:$0xff]  }
 0x6ad   :  { %2872 = vmatmul.mubr.bf16.gmra.mrb[60].mxu1 %v1518_v41  ;;  %v3080_v41 = vmov 0.0  }
 0x6ae   :  { %2907 = vmatprep.subr.bf16.mxu1 %v3080_v41  ;;  %2923 = vmatprep.mubr.msk.bf16.mxu1 %vm3081_vm0, %v3080_v41 }
 0x768   :  { %v2861_v50 = vpop.f32.mrb[48].mxu1 }
 0x769   :  { %v1601_v55 = vpop.f32.mrb[49].mxu1 }
 0x76a   :  { %v2862_v51 = vpop.f32.mrb[50].mxu1 }
 0x76b   :  { %v1665_v8 = vpack.c.bf16 %v2862_v51, %v2861_v50  ;;  %v1604_v53 = vpop.f32.mrb[51].mxu1  ;;  %v3048_v50 = vld [vmem:[%s4066_s7] sm:$0xff]   ;;  %v3050_v51 = vld [vmem:[%s4066_s7 + $0x10] sm:$0xff]  }
 0x76c   :  { %v1664_v23 = vpack.c.bf16 %v1604_v53, %v1601_v55  ;;  %v3049_v55 = vld [vmem:[%s4066_s7 + $0x8] sm:$0xff]   ;;  %v3052_v53 = vld [vmem:[%s4066_s7 + $0x20] sm:$0xff]  }
 0x76e   :  { %2875 = vmatprep.subr.bf16.mxu0 %v1664_v23 }
 0x76f   :  { %2876 = vmatpush3.bf16.msra.mxu0 %v1664_v23  ;;  %v3053_v23 = vld [vmem:[%s4066_s7 + $0x28] sm:$0xff]  }
 0x770   :  { %v2865_v57 = vpop.f32.mrb[52].mxu1  ;;  %2877 = vmatprep.subr.bf16.mxu0 %v1665_v8 }
 0x771   :  { %v1617_v28 = vpop.f32.mrb[53].mxu1 }
 0x772   :  { %v2866_v58 = vpop.f32.mrb[54].mxu1 }
 0x773   :  { %v1667_v37 = vpack.c.bf16 %v2866_v58, %v2865_v57  ;;  %v1620_v39 = vpop.f32.mrb[55].mxu1  ;;  %2878 = vmatpush3.bf16.msra.mxu0 %v1665_v8  ;;  %v3051_v8 = vld [vmem:[%s4066_s7 + $0x18] sm:$0xff]   ;;  %v3054_v57 = vld [vmem:[%s4066_s7 + $0x30] sm:$0xff]  }
 0x774   :  { %v1666_v24 = vpack.c.bf16 %v1620_v39, %v1617_v28  ;;  %v3896_v28 = vld [vmem:[%s4062_s4 + $0x4] ss:$0 sm:$0xff] }
 0x776   :  { %2879 = vmatprep.subr.bf16.mxu0 %v1666_v24 }
 0x777   :  { %2880 = vmatpush3.bf16.msra.mxu0 %v1666_v24  ;;  %v3902_v24 = vld [vmem:[%s4065_s5 + $0x4] ss:$0 sm:$0xff] }
 0x778   :  { %v2869_v52 = vpop.f32.mrb[56].mxu1  ;;  %2881 = vmatprep.subr.bf16.mxu0 %v1667_v37 }
 0x779   :  { %v1633_v25 = vpop.f32.mrb[57].mxu1 }
 0x77a   :  { %v2870_v59 = vpop.f32.mrb[58].mxu1 }
 0x77b   :  { %v1669_v20 = vpack.c.bf16 %v2870_v59, %v2869_v52  ;;  %v1636_v26 = vpop.f32.mrb[59].mxu1  ;;  %2882 = vmatpush3.bf16.msra.mxu0 %v1667_v37 }
 0x77c   :  { %v1668_v34 = vpack.c.bf16 %v1636_v26, %v1633_v25 }
 0x77e   :  { %2883 = vmatprep.subr.bf16.mxu0 %v1668_v34 }
 0x77f   :  { %2884 = vmatpush3.bf16.msra.mxu0 %v1668_v34 }
 0x780   :  { %v2873_v54 = vpop.f32.mrb[60].mxu1  ;;  %2885 = vmatprep.subr.bf16.mxu0 %v1669_v20 }
 0x781   :  { %v1649_v33 = vpop.f32.mrb[61].mxu1 }
 0x782   :  { %v2874_v36 = vpop.f32.mrb[62].mxu1 }
 0x783   :  { %v1671_v30 = vpack.c.bf16 %v2874_v36, %v2873_v54  ;;  %v1652_v2 = vpop.f32.mrb[63].mxu1  ;;  %2886 = vmatpush3.bf16.msra.mxu0 %v1669_v20 }
 0x784   :  { %v1670_v61 = vpack.c.bf16 %v1652_v2, %v1649_v33 }
 0x786   :  { %2887 = vmatprep.subr.bf16.mxu0 %v1670_v61 }
 0x787   :  { %2888 = vmatpush3.bf16.msra.mxu0 %v1670_v61 }
 0x788   :  { %2889 = vmatprep.subr.bf16.mxu0 %v1671_v30 }
 0x78b   :  { %2890 = vmatpush3.bf16.msra.mxu0 %v1671_v30 }
 0x78c   :  { %2927 = vmatprep.subr.bf16.mxu0 %v3080_v41 }
 0x78e   :  { %2892 = vmatmul.mubr.bf16.vlgmr.msra.gmra.mrb[64].mxu0 %v3072_v7 }
 0x78f   :  { %2895 = vmatprep.mubr.bf16.mxu0 %v3073_v42  ;;  %2928 = vmatpush3.bf16.msra.mxu0 %v3048_v50 }
 0x790   :  { %2929 = vmatprep.subr.bf16.mxu0 %v3080_v41 }
 0x793   :  { %2930 = vmatpush3.bf16.msra.mxu0 %v3049_v55 }
 0x794   :  { %2931 = vmatprep.subr.bf16.mxu0 %v3080_v41 }
 0x796   :  { %2896 = vmatmul.mubr.bf16.gmra.mrb[68].mxu0 %v3074_v40 }
 0x797   :  { %2899 = vmatprep.mubr.bf16.mxu0 %v3075_v63  ;;  %2932 = vmatpush3.bf16.msra.mxu0 %v3050_v51 }
 0x798   :  { %2933 = vmatprep.subr.bf16.mxu0 %v3080_v41 }
 0x79b   :  { %2934 = vmatpush3.bf16.msra.mxu0 %v3051_v8 }
 0x79c   :  { %2935 = vmatprep.subr.bf16.mxu0 %v3080_v41 }
 0x79e   :  { %2900 = vmatmul.mubr.bf16.gmra.mrb[72].mxu0 %v3076_v35 }
 0x79f   :  { %2903 = vmatprep.mubr.bf16.mxu0 %v3077_v19  ;;  %2936 = vmatpush3.bf16.msra.mxu0 %v3052_v53 }
 0x7a0   :  { %2937 = vmatprep.subr.bf16.mxu0 %v3080_v41 }
 0x7a3   :  { %2938 = vmatpush3.bf16.msra.mxu0 %v3053_v23 }
 0x7a4   :  { %2939 = vmatprep.subr.bf16.mxu0 %v3080_v41 }
 0x7a6   :  { %2904 = vmatmul.mubr.bf16.gmra.mrb[76].mxu0 %v3078_v6 }
 0x7a7   :  { %2943 = vmatprep.mubr.msk.bf16.mxu0 %vm3081_vm0, %v3080_v41  ;;  %2940 = vmatpush3.bf16.msra.mxu0 %v3054_v57 }
 0x7a8   :  { %2941 = vmatprep.subr.bf16.mxu0 %v3080_v41 }
 0x861   :  { %v2893_v58 = vpop.f32.mrb[64].mxu0 }
 0x862   :  { %v1721_v37 = vadd.f32 %v2893_v58, %v3896_v28  ;;  %v1712_v39 = vpop.f32.mrb[65].mxu0 }
 0x863   :  { %v1713_v52 = vadd.f32 %v3896_v28, %v1712_v39  ;;  %v2894_v25 = vpop.f32.mrb[66].mxu0 }
 0x864   :  { %v1777_v59 = vmul.f32 %v1721_v37, %v3378_v12  ;;  %v1724_v20 = vadd.f32 %v2894_v25, %v3896_v28  ;;  %v1715_v26 = vpop.f32.mrb[67].mxu0 }
 0x865   :  { %v1775_v34 = vmul.f32 %v1713_v52, %v3376_v11  ;;  %v1716_v54 = vadd.f32 %v3896_v28, %v1715_v26 }
 0x866   :  { %v1799_v33 = vadd.f32 %v3902_v24, %v1777_v59  ;;  %v1778_v36 = vmul.f32 %v1724_v20, %v3382_v14 }
 0x867   :  { %v1797_v30 = vadd.f32 %v3902_v24, %v1775_v34  ;;  %v1776_v2 = vmul.f32 %v1716_v54, %v3380_v13 }
 0x868   :  { %v1815_v61 = vmax.f32 %v1799_v33, 0.0  ;;  %v1800_v7 = vadd.f32 %v3902_v24, %v1778_v36 }
 0x869   :  { %v1813_v42 = vmax.f32 %v1797_v30, 0.0  ;;  %v1798_v12 = vadd.f32 %v3902_v24, %v1776_v2  ;;  %v2897_v40 = vpop.f32.mrb[68].mxu0 }
 0x86a   :  { %v1816_v63 = vmax.f32 %v1800_v7, 0.0  ;;  %v1737_v11 = vadd.f32 %v2897_v40, %v3896_v28  ;;  %v1728_v35 = vpop.f32.mrb[69].mxu0  ;;  %v1831_v14 = vadd.f32 %v1815_v61, %v3754_v17 }
 0x86b   :  { %v1814_v19 = vmax.f32 %v1798_v12, 0.0  ;;  %v1729_v6 = vadd.f32 %v3896_v28, %v1728_v35  ;;  %v2898_v50 = vpop.f32.mrb[70].mxu0  ;;  %v1829_v53 = vadd.f32 %v1813_v42, %v3748_v4 }
 0x86c   :  { %v1832_v55 = vadd.f32 %v1816_v63, %v3741_v47  ;;  %v1781_v13 = vmul.f32 %v1737_v11, %v3394_v21  ;;  %v1740_v51 = vadd.f32 %v2898_v50, %v3896_v28  ;;  %v1731_v8 = vpop.f32.mrb[71].mxu0 }
 0x86d   :  { %v1830_v23 = vadd.f32 %v1814_v19, %v3751_v5  ;;  %v1779_v57 = vmul.f32 %v1729_v6, %v3384_v15  ;;  %v1732_v58 = vadd.f32 %v3896_v28, %v1731_v8 }
 0x86e   :  { %v1803_v37 = vadd.f32 %v3902_v24, %v1781_v13  ;;  %v1782_v39 = vmul.f32 %v1740_v51, %v3404_v29  ;;  %v1847_v17 = vpack.c.bf16 %v1832_v55, %v1831_v14 }
 0x86f   :  { %v1801_v47 = vadd.f32 %v3902_v24, %v1779_v57  ;;  %v1780_v21 = vmul.f32 %v1732_v58, %v3386_v16  ;;  %v1846_v52 = vpack.c.bf16 %v1830_v23, %v1829_v53 }
 0x870   :  { %v1819_v25 = vmax.f32 %v1803_v37, 0.0  ;;  %v1804_v59 = vadd.f32 %v3902_v24, %v1782_v39 }
 0x871   :  { %v1817_v4 = vmax.f32 %v1801_v47, 0.0  ;;  %v1802_v5 = vadd.f32 %v3902_v24, %v1780_v21  ;;  %v2901_v20 = vpop.f32.mrb[72].mxu0  ;;  %2908 = vmatpush3.bf16.msra.mxu1 %v1846_v52 }
 0x872   :  { %v1820_v15 = vmax.f32 %v1804_v59, 0.0  ;;  %v1753_v26 = vadd.f32 %v2901_v20, %v3896_v28  ;;  %v1744_v34 = vpop.f32.mrb[73].mxu0  ;;  %2909 = vmatprep.subr.bf16.mxu1 %v3080_v41  ;;  %v1835_v16 = vadd.f32 %v1819_v25, %v3784_v0 }
 0x873   :  { %v1818_v29 = vmax.f32 %v1802_v5, 0.0  ;;  %v1745_v54 = vadd.f32 %v3896_v28, %v1744_v34  ;;  %v2902_v33 = vpop.f32.mrb[74].mxu0  ;;  %v1833_v7 = vadd.f32 %v1817_v4, %v3776_v43  ;;  %v3060_v34 = vld [vmem:[%s4066_s7 + $0x60] sm:$0xff]  }
 0x874   :  { %v1836_v36 = vadd.f32 %v1820_v15, %v3771_v48  ;;  %v1785_v30 = vmul.f32 %v1753_v26, %v3438_v27  ;;  %v1756_v2 = vadd.f32 %v2902_v33, %v3896_v28  ;;  %v1747_v61 = vpop.f32.mrb[75].mxu0  ;;  %v3059_v26 = vld [vmem:[%s4066_s7 + $0x58] sm:$0xff]  }
 0x875   :  { %v1834_v42 = vadd.f32 %v1818_v29, %v3779_v45  ;;  %v1783_v12 = vmul.f32 %v1745_v54, %v3413_v44  ;;  %v1748_v40 = vadd.f32 %v3896_v28, %v1747_v61  ;;  %2910 = vmatpush3.bf16.msra.mxu1 %v1847_v17  ;;  %v3061_v29 = vld [vmem:[%s4066_s7 + $0x68] sm:$0xff]   ;;  %v3063_v61 = vld [vmem:[%s4066_s7 + $0x78] sm:$0xff]  }
 0x876   :  { %v1807_v63 = vadd.f32 %v3902_v24, %v1785_v30  ;;  %v1786_v0 = vmul.f32 %v1756_v2, %v3447_v32  ;;  %2911 = vmatprep.subr.bf16.mxu1 %v3080_v41  ;;  %v1849_v48 = vpack.c.bf16 %v1836_v36, %v1835_v16  ;;  %v3062_v2 = vld [vmem:[%s4066_s7 + $0x70] sm:$0xff]  }
 0x877   :  { %v1805_v27 = vadd.f32 %v3902_v24, %v1783_v12  ;;  %v1784_v11 = vmul.f32 %v1748_v40, %v3417_v56  ;;  %v1848_v35 = vpack.c.bf16 %v1834_v42, %v1833_v7  ;;  %v3064_v7 = vld [vmem:[%s4066_s7 + $0x80] sm:$0xff]   ;;  %v3065_v42 = vld [vmem:[%s4066_s7 + $0x88] sm:$0xff]   ;;  %v3066_v12 = vld [vmem:[%s4066_s7 + $0x90] sm:$0xff]  }
 0x878   :  { %v1823_v43 = vmax.f32 %v1807_v63, 0.0  ;;  %v1808_v45 = vadd.f32 %v3902_v24, %v1786_v0  ;;  %v3067_v40 = vld [vmem:[%s4066_s7 + $0x98] sm:$0xff]   ;;  %v3068_v63 = vld [vmem:[%s4066_s7 + $0xa0] sm:$0xff]   ;;  %v3069_v0 = vld [vmem:[%s4066_s7 + $0xa8] sm:$0xff]  }
 0x879   :  { %v1821_v19 = vmax.f32 %v1805_v27, 0.0  ;;  %v1806_v44 = vadd.f32 %v3902_v24, %v1784_v11  ;;  %v2905_v6 = vpop.f32.mrb[76].mxu0  ;;  %2912 = vmatpush3.bf16.msra.mxu1 %v1848_v35 }
 0x87a   :  { %v1824_v50 = vmax.f32 %v1808_v45, 0.0  ;;  %v1769_v14 = vadd.f32 %v2905_v6, %v3896_v28  ;;  %v1760_v32 = vpop.f32.mrb[77].mxu0  ;;  %2913 = vmatprep.subr.bf16.mxu1 %v3080_v41  ;;  %v1839_v56 = vadd.f32 %v1823_v43, %v3812_v31  ;;  %v3070_v6 = vld [vmem:[%s4066_s7 + $0xb0] sm:$0xff]  }
 0x87b   :  { %v1822_v55 = vmax.f32 %v1806_v44, 0.0  ;;  %v1761_v13 = vadd.f32 %v3896_v28, %v1760_v32  ;;  %v2906_v51 = vpop.f32.mrb[78].mxu0  ;;  %v1837_v58 = vadd.f32 %v1821_v19, %v3804_v60 }
 0x87c   :  { %v1840_v8 = vadd.f32 %v1824_v50, %v3799_v18  ;;  %v1789_v53 = vmul.f32 %v1769_v14, %v3483_v46  ;;  %v1772_v23 = vadd.f32 %v2906_v51, %v3896_v28  ;;  %v1763_v57 = vpop.f32.mrb[79].mxu0  ;;  %v3071_v50 = vld [vmem:[%s4066_s7 + $0xb8] sm:$0xff]   ;;  %v2404_v14 = vld [vmem:[%s4068_s8 + $0x1] ss:$0 sm:$0xff] }
 0x87d   :  { %v1838_v37 = vadd.f32 %v1822_v55, %v3807_v62  ;;  %v1787_v39 = vmul.f32 %v1761_v13, %v3457_v9  ;;  %v1764_v17 = vadd.f32 %v3896_v28, %v1763_v57  ;;  %2914 = vmatpush3.bf16.msra.mxu1 %v1849_v48  ;;  %v2378_v48 = vld [vmem:[%s4068_s8] ss:$0 sm:$0xff] }
 0x87e   :  { %v1811_v47 = vadd.f32 %v3902_v24, %v1789_v53  ;;  %v1790_v31 = vmul.f32 %v1772_v23, %v3491_v10  ;;  %2915 = vmatprep.subr.bf16.mxu1 %v3080_v41  ;;  %v1851_v18 = vpack.c.bf16 %v1840_v8, %v1839_v56 }
 0x87f   :  { %v1809_v46 = vadd.f32 %v3902_v24, %v1787_v39  ;;  %v1788_v21 = vmul.f32 %v1764_v17, %v3472_v38  ;;  %v1850_v52 = vpack.c.bf16 %v1838_v37, %v1837_v58 }
 0x880   :  { %v1827_v60 = vmax.f32 %v1811_v47, 0.0  ;;  %v1812_v62 = vadd.f32 %v3902_v24, %v1790_v31 }
 0x881   :  { %v1825_v25 = vmax.f32 %v1809_v46, 0.0  ;;  %v1810_v9 = vadd.f32 %v3902_v24, %v1788_v21  ;;  %2916 = vmatpush3.bf16.msra.mxu1 %v1850_v52  ;;  %v1845_v24 = vld [vmem:[%s4067_s6] sm:$0xf] }
 0x882   :  { %v1828_v28 = vmax.f32 %v1812_v62, 0.0  ;;  %2917 = vmatprep.subr.bf16.mxu1 %v3080_v41  ;;  %v1843_v10 = vadd.f32 %v1827_v60, %v3832_v49  ;;  %v3058_v49 = vld [vmem:[%s4066_s7 + $0x50] sm:$0xff]  }
 0x883   :  { %v1826_v59 = vmax.f32 %v1810_v9, 0.0  ;;  %v1841_v5 = vadd.f32 %v1825_v25, %v3826_v3  ;;  %v3056_v3 = vld [vmem:[%s4066_s7 + $0x40] sm:$0xff]  }
 0x884   :  { %v1844_v4 = vadd.f32 %v1828_v28, %v3823_v1  ;;  %v3055_v1 = vld [vmem:[%s4066_s7 + $0x38] sm:$0xff]  }
 0x885   :  { %v1842_v38 = vadd.f32 %v1826_v59, %v3829_v22  ;;  %2918 = vmatpush3.bf16.msra.mxu1 %v1851_v18  ;;  %2942 = vmatpush3.bf16.msra.mxu0 %v3055_v1  ;;  %v3057_v22 = vld [vmem:[%s4066_s7 + $0x48] sm:$0xff]  }
 0x886   :  { %2919 = vmatprep.subr.bf16.mxu1 %v3080_v41  ;;  %v1853_v20 = vpack.c.bf16 %v1844_v4, %v1843_v10  ;;  %2967 = vmatprep.subr.bf16.mxu0 %v3080_v41 }
 0x887   :  { %v1852_v15 = vpack.c.bf16 %v1842_v38, %v1841_v5 }
 0x889   :  { %2920 = vmatpush3.bf16.msra.mxu1 %v1852_v15 }
 0x88a   :  { %2921 = vmatprep.subr.bf16.mxu1 %v3080_v41 }
 0x88d   :  { %2922 = vmatpush3.bf16.msra.mxu1 %v1853_v20 }
 0x88e   :  { %2947 = vmatprep.subr.bf16.mxu1 %v3080_v41 }
 0x890   :  { %2924 = vmatmul.mubr.bf16.vlgmr.msra.gmra.mrb[64].mxu1 %v1845_v24 }
 0x891   :  { %2963 = vmatprep.mubr.msk.bf16.mxu1 %vm3081_vm0, %v3080_v41  ;;  %2948 = vmatpush3.bf16.msra.mxu1 %v3056_v3 }
 0x892   :  { %2949 = vmatprep.subr.bf16.mxu1 %v3080_v41 }
 0x895   :  { %2950 = vmatpush3.bf16.msra.mxu1 %v3057_v22 }
 0x896   :  { %2951 = vmatprep.subr.bf16.mxu1 %v3080_v41 }
 0x899   :  { %2952 = vmatpush3.bf16.msra.mxu1 %v3058_v49 }
 0x89a   :  { %2953 = vmatprep.subr.bf16.mxu1 %v3080_v41 }
 0x89d   :  { %2954 = vmatpush3.bf16.msra.mxu1 %v3059_v26 }
 0x89e   :  { %2955 = vmatprep.subr.bf16.mxu1 %v3080_v41 }
 0x8a1   :  { %2956 = vmatpush3.bf16.msra.mxu1 %v3060_v34 }
 0x8a2   :  { %2957 = vmatprep.subr.bf16.mxu1 %v3080_v41 }
 0x8a5   :  { %2958 = vmatpush3.bf16.msra.mxu1 %v3061_v29 }
 0x8a6   :  { %2959 = vmatprep.subr.bf16.mxu1 %v3080_v41 }
 0x8a9   :  { %2960 = vmatpush3.bf16.msra.mxu1 %v3062_v2 }
 0x8aa   :  { %2961 = vmatprep.subr.bf16.mxu1 %v3080_v41 }
 0x8ad   :  { %2962 = vmatpush3.bf16.msra.mxu1 %v3063_v61 }
 0x963   :  { %v1888_v54 = vpop.f32.mrb[64].mxu1 }
 0x964   :  { %v1894_v33 = vpack.c.bf16 %v1888_v54, %v1888_v54  ;;  %v2925_v16 = vpop.f32.mrb[65].mxu1 }
 0x965   :  { %v1891_v36 = vpop.f32.mrb[66].mxu1 }
 0x966   :  { %v2926_v30 = vpop.f32.mrb[67].mxu1  ;;  %2944 = vmatmul.mubr.bf16.vlgmr.msra.gmra.mrb[80].mxu0 %v1894_v33 }
 0x967   :  { %2983 = vmatprep.mubr.msk.bf16.mxu0 %vm3081_vm0, %v3080_v41  ;;  %2968 = vmatpush3.bf16.msra.mxu0 %v3064_v7 }
 0x968   :  { %2969 = vmatprep.subr.bf16.mxu0 %v3080_v41 }
 0x96b   :  { %2970 = vmatpush3.bf16.msra.mxu0 %v3065_v42 }
 0x96c   :  { %2971 = vmatprep.subr.bf16.mxu0 %v3080_v41 }
 0x96f   :  { %2972 = vmatpush3.bf16.msra.mxu0 %v3066_v12 }
 0x970   :  { %2973 = vmatprep.subr.bf16.mxu0 %v3080_v41 }
 0x973   :  { %2974 = vmatpush3.bf16.msra.mxu0 %v3067_v40 }
 0x974   :  { %2975 = vmatprep.subr.bf16.mxu0 %v3080_v41 }
 0x977   :  { %2976 = vmatpush3.bf16.msra.mxu0 %v3068_v63 }
 0x978   :  { %2977 = vmatprep.subr.bf16.mxu0 %v3080_v41 }
 0x97b   :  { %2978 = vmatpush3.bf16.msra.mxu0 %v3069_v0 }
 0x97c   :  { %2979 = vmatprep.subr.bf16.mxu0 %v3080_v41 }
 0x97f   :  { %2980 = vmatpush3.bf16.msra.mxu0 %v3070_v6 }
 0x980   :  { %2981 = vmatprep.subr.bf16.mxu0 %v3080_v41  ;;  %v2430_v41 = vld [vmem:[%s4068_s8 + $0x2] ss:$0 sm:$0xff] }
 0x983   :  { %2982 = vmatpush3.bf16.msra.mxu0 %v3071_v50 }
 0xa39   :  { %v2000_v27 = vpop.f32.mrb[80].mxu0 }
 0xa3a   :  { %v2001_v11 = vadd.f32 %v2378_v48, %v2000_v27  ;;  %v2945_v35 = vpop.f32.mrb[81].mxu0 }
 0xa3b   :  { %v2003_v43 = vpop.f32.mrb[82].mxu0 }
 0xa3c   :  { %v2006_v45 = vmax.f32 %v2001_v11, 0.0  ;;  %v2946_v19 = vpop.f32.mrb[83].mxu0 }
 0xa3e   :  { %v2007_v44 = vpack.c.bf16 %v2006_v45, %v2006_v45 }
 0xa40   :  { %2964 = vmatmul.mubr.bf16.vlgmr.msra.gmra.mrb[68].mxu1 %v2007_v44 }
 0xb13   :  { %v2115_v32 = vpop.f32.mrb[68].mxu1 }
 0xb14   :  { %v2116_v55 = vadd.f32 %v2404_v14, %v2115_v32  ;;  %v2965_v13 = vpop.f32.mrb[69].mxu1 }
 0xb15   :  { %v2118_v51 = vpop.f32.mrb[70].mxu1 }
 0xb16   :  { %v2121_v56 = vmax.f32 %v2116_v55, 0.0  ;;  %v2966_v8 = vpop.f32.mrb[71].mxu1 }
 0xb18   :  { %v2122_v53 = vpack.c.bf16 %v2121_v56, %v2121_v56 }
 0xb1a   :  { %2984 = vmatmul.mubr.bf16.vlgmr.msra.gmra.mrb[84].mxu0 %v2122_v53 }
 0xbed   :  { %v2230_v23 = vpop.f32.mrb[84].mxu0 }
 0xbee   :  { %v2231_v57 = vadd.f32 %v2430_v41, %v2230_v23  ;;  %v2985_v58 = vpop.f32.mrb[85].mxu0 }
 0xbef   :  { %v2233_v37 = vpop.f32.mrb[86].mxu0 }
 0xbf0   :  { %2236 = vst [vmem:[%s4069_s9] sm:$0xff] %v2231_v57  ;;  %v2986_v39 = vpop.f32.mrb[87].mxu0 }

</bundles_post_ra>
